<compile_context>
chip_gen: v7x
topology: tpu7x:2x2x1
jax: 0.10.0
libtpu: 0.0.40
codegen_flags: <defaults>
</compile_context>

<pallas_src>
import jax
import jax.numpy as jnp
from jax.experimental import pallas as pl
from jax.experimental.pallas import tpu as pltpu

# ---- synthetic BERT config (small, deterministic) -------------------------
VOCAB = 100
MAX_POS = 64
TYPE_VOCAB = 2
H = 32            # hidden size
LAYERS = 2
HEADS = 4
DH = H // HEADS   # head dim
INTER = 64        # intermediate (FFN) size
CLASSES = 3
LN_EPS = 1e-12


# ------------------------------ fused kernel -------------------------------

def _mybert_kernel(emb_ref, mask_ref, eg_ref, eb_ref,
                   wqkv_ref, bqkv_ref, wo_ref, bo_ref, g1_ref, b1_ref,
                   wi_ref, bi_ref, wf_ref, bf_ref, g2_ref, b2_ref,
                   pw_ref, pb_ref, cw_ref, cb_ref,
                   o_ref, ctx_ref):
    """One grid step = one batch element's full forward pass (weights in VMEM)."""

    def mm(x, w_bf16):
        # MXU matmul: bf16 operands, f32 accumulation.
        return jnp.dot(x.astype(jnp.bfloat16), w_bf16,
                       preferred_element_type=jnp.float32)

    def layer_norm(x, g, b):
        mu = jnp.mean(x, axis=-1, keepdims=True)
        xc = x - mu
        var = jnp.mean(xc * xc, axis=-1, keepdims=True)
        return xc * jax.lax.rsqrt(var + LN_EPS) * g + b

    # residual-free embedding LayerNorm (no zeros tensor materialized)
    x = layer_norm(emb_ref[0], eg_ref[...], eb_ref[...])     # (S, H)
    add_mask = mask_ref[0]                                   # (1, S) additive mask

    for l in range(LAYERS):
        # --- fused QKV projection (1/sqrt(DH) already folded into Q weights) ---
        qkv = mm(x, wqkv_ref[l]) + bqkv_ref[l]               # (S, 3H) f32
        q = qkv[:, 0:H]
        k = qkv[:, H:2 * H]
        v = qkv[:, 2 * H:3 * H]

        # --- multi-head self-attention, all heads inside this grid step ---
        for h in range(HEADS):
            sl = slice(h * DH, (h + 1) * DH)
            s = jax.lax.dot_general(
                q[:, sl].astype(jnp.bfloat16), k[:, sl].astype(jnp.bfloat16),
                (((1,), (1,)), ((), ())),
                preferred_element_type=jnp.float32)           # (S, S)
            s = s + add_mask
            s = s - jnp.max(s, axis=-1, keepdims=True)
            p = jnp.exp(s)
            p = p * pl.reciprocal(jnp.sum(p, axis=-1, keepdims=True), approx=True)
            ctx_ref[:, sl] = jnp.dot(
                p.astype(jnp.bfloat16), v[:, sl].astype(jnp.bfloat16),
                preferred_element_type=jnp.float32)           # (S, DH)
        ctx = ctx_ref[...]                                    # (S, H)

        attn_out = mm(ctx, wo_ref[l]) + bo_ref[l]
        x = layer_norm(attn_out + x, g1_ref[l], b1_ref[l])

        # --- feed-forward ---
        inter = mm(x, wi_ref[l]) + bi_ref[l]                  # (S, INTER)
        # TODO(synk): tanh-approx GELU; HF BERT's default is the exact erf GELU.
        c = 0.7978845608028654  # sqrt(2/pi)
        inter = 0.5 * inter * (1.0 + jnp.tanh(c * (inter + 0.044715 * inter * inter * inter)))
        ffn = mm(inter, wf_ref[l]) + bf_ref[l]
        x = layer_norm(ffn + x, g2_ref[l], b2_ref[l])

    # --- pooler: tanh(dense(first token)) ---
    pooled = jnp.tanh(mm(x[0:1, :], pw_ref[...]) + pb_ref[...])   # (1, H)

    # --- dropout(p=0.2) -> identity at inference, linear, softmax(dim=1) ---
    # TODO(synk): training-mode dropout not implemented (identity in eval).
    logits = mm(pooled, cw_ref[...]) + cb_ref[...]                # (1, CLASSES)
    logits = logits - jnp.max(logits, axis=-1, keepdims=True)
    e = jnp.exp(logits)
    o_ref[0] = e / jnp.sum(e, axis=-1, keepdims=True)


# -------------------------- parameters & forward ---------------------------

def init_params(key):
    std = 0.02
    keys = iter(jax.random.split(key, 4 + LAYERS * 8 + 4))

    def dense(din, dout):
        return (jax.random.normal(next(keys), (din, dout), jnp.float32) * std,
                jnp.zeros((1, dout), jnp.float32))

    p = {
        "word_emb": jax.random.normal(next(keys), (VOCAB, H), jnp.float32) * std,
        "pos_emb": jax.random.normal(next(keys), (MAX_POS, H), jnp.float32) * std,
        "type_emb": jax.random.normal(next(keys), (TYPE_VOCAB, H), jnp.float32) * std,
        "emb_ln_g": jnp.ones((1, H), jnp.float32),
        "emb_ln_b": jnp.zeros((1, H), jnp.float32),
        "layers": [],
    }
    for _ in range(LAYERS):
        lp = {}
        lp["wq"], lp["bq"] = dense(H, H)
        lp["wk"], lp["bk"] = dense(H, H)
        lp["wv"], lp["bv"] = dense(H, H)
        lp["wo"], lp["bo"] = dense(H, H)
        lp["ln1_g"] = jnp.ones((1, H), jnp.float32)
        lp["ln1_b"] = jnp.zeros((1, H), jnp.float32)
        lp["wi"], lp["bi"] = dense(H, INTER)
        lp["wf"], lp["bf"] = dense(INTER, H)
        lp["ln2_g"] = jnp.ones((1, H), jnp.float32)
        lp["ln2_b"] = jnp.zeros((1, H), jnp.float32)
        p["layers"].append(lp)
    p["pool_w"], p["pool_b"] = dense(H, H)
    p["cls_w"], p["cls_b"] = dense(H, CLASSES)
    return p


def fuse_params(p):
    """One-time re-packing for the fused kernel:
    - concat Q/K/V weights -> (H, 3H) with 1/sqrt(DH) folded into Q,
    - stack per-layer tensors along a leading layer axis,
    - pre-cast matmul weights to bf16 (biases / LN params stay f32)."""
    scale = 1.0 / (DH ** 0.5)
    cols = {k: [] for k in ("wqkv", "bqkv", "wo", "bo", "ln1_g", "ln1_b",
                            "wi", "bi", "wf", "bf", "ln2_g", "ln2_b")}
    for lp in p["layers"]:
        cols["wqkv"].append(jnp.concatenate([lp["wq"] * scale, lp["wk"], lp["wv"]], axis=1))
        cols["bqkv"].append(jnp.concatenate([lp["bq"] * scale, lp["bk"], lp["bv"]], axis=1))
        for k in ("wo", "bo", "ln1_g", "ln1_b", "wi", "bi", "wf", "bf", "ln2_g", "ln2_b"):
            cols[k].append(lp[k])
    stacked = {k: jnp.stack(v, axis=0) for k, v in cols.items()}
    for k in ("wqkv", "wo", "wi", "wf"):
        stacked[k] = stacked[k].astype(jnp.bfloat16)
    fp = {
        "word_emb": p["word_emb"], "pos_emb": p["pos_emb"], "type_emb": p["type_emb"],
        "emb_ln_g": p["emb_ln_g"], "emb_ln_b": p["emb_ln_b"],
        "pool_w": p["pool_w"].astype(jnp.bfloat16), "pool_b": p["pool_b"],
        "cls_w": p["cls_w"].astype(jnp.bfloat16), "cls_b": p["cls_b"],
    }
    fp.update(stacked)
    return fp


_WEIGHT_ORDER = ("emb_ln_g", "emb_ln_b",
                 "wqkv", "bqkv", "wo", "bo", "ln1_g", "ln1_b",
                 "wi", "bi", "wf", "bf", "ln2_g", "ln2_b",
                 "pool_w", "pool_b", "cls_w", "cls_b")


def mybert_forward(fp, input_ids, attention_mask):
    B, S = input_ids.shape
    # --- embeddings (table gathers are plain-JAX glue; everything else is Pallas) ---
    emb = (fp["word_emb"][input_ids]
           + fp["pos_emb"][jnp.arange(S)][None, :, :]
           + fp["type_emb"][0][None, None, :])                                   # (B, S, H)
    add_mask = (1.0 - attention_mask.astype(jnp.float32))[:, None, :] * -10000.0  # (B, 1, S)

    weights = [fp[k] for k in _WEIGHT_ORDER]
    in_specs = [
        pl.BlockSpec((1, S, H), lambda b: (b, 0, 0)),        # per-batch embeddings
        pl.BlockSpec((1, 1, S), lambda b: (b, 0, 0)),        # per-batch additive mask
    ]
    for w in weights:                                        # weights: full-block, VMEM-resident
        in_specs.append(pl.BlockSpec(w.shape, lambda b, nd=w.ndim: (0,) * nd))

    probs = pl.pallas_call(
        _mybert_kernel,
        out_shape=jax.ShapeDtypeStruct((B, 1, CLASSES), jnp.float32),
        grid=(B,),
        in_specs=in_specs,
        out_specs=pl.BlockSpec((1, 1, CLASSES), lambda b: (b, 0, 0)),
        scratch_shapes=[pltpu.VMEM((S, H), jnp.float32)],     # attention context assembly
        compiler_params=pltpu.CompilerParams(
            dimension_semantics=("parallel",)),               # v7x: one batch per TensorCore
    )(emb, add_mask, *weights)
    return probs.reshape(B, CLASSES)


if __name__ == "__main__":
    key = jax.random.PRNGKey(0)
    k_param, k_ids = jax.random.split(key)
    params = fuse_params(init_params(k_param))

    B, S = 2, 8
    input_ids = jax.random.randint(k_ids, (B, S), 0, VOCAB, dtype=jnp.int32)
    attention_mask = jnp.array(
        [[1, 1, 1, 1, 1, 1, 1, 1],
         [1, 1, 1, 1, 1, 0, 0, 0]], dtype=jnp.int32)

    probs = jax.jit(mybert_forward)(params, input_ids, attention_mask)
    probs = jax.block_until_ready(probs)

    assert probs.shape == (B, CLASSES)
    assert bool(jnp.all(jnp.isfinite(probs)))
    assert bool(jnp.allclose(jnp.sum(probs, axis=1), 1.0, atol=1e-5))
    print("KERNEL_OK")
</pallas_src>

<mosaic_0001>
module attributes {stable_mosaic.version = 11 : i64} {
  func.func @_mybert_kernel(%arg0: i32, %arg1: memref<1x8x32xf32, #tpu.memory_space<vmem>>, %arg2: memref<1x1x8xf32, #tpu.memory_space<vmem>>, %arg3: memref<1x32xf32, #tpu.memory_space<vmem>>, %arg4: memref<1x32xf32, #tpu.memory_space<vmem>>, %arg5: memref<2x32x96xbf16, #tpu.memory_space<vmem>>, %arg6: memref<2x1x96xf32, #tpu.memory_space<vmem>>, %arg7: memref<2x32x32xbf16, #tpu.memory_space<vmem>>, %arg8: memref<2x1x32xf32, #tpu.memory_space<vmem>>, %arg9: memref<2x1x32xf32, #tpu.memory_space<vmem>>, %arg10: memref<2x1x32xf32, #tpu.memory_space<vmem>>, %arg11: memref<2x32x64xbf16, #tpu.memory_space<vmem>>, %arg12: memref<2x1x64xf32, #tpu.memory_space<vmem>>, %arg13: memref<2x64x32xbf16, #tpu.memory_space<vmem>>, %arg14: memref<2x1x32xf32, #tpu.memory_space<vmem>>, %arg15: memref<2x1x32xf32, #tpu.memory_space<vmem>>, %arg16: memref<2x1x32xf32, #tpu.memory_space<vmem>>, %arg17: memref<32x32xbf16, #tpu.memory_space<vmem>>, %arg18: memref<1x32xf32, #tpu.memory_space<vmem>>, %arg19: memref<32x3xbf16, #tpu.memory_space<vmem>>, %arg20: memref<1x3xf32, #tpu.memory_space<vmem>>, %arg21: memref<1x1x3xf32, #tpu.memory_space<vmem>>, %arg22: memref<8x32xf32, #tpu.memory_space<vmem>>) attributes {dimension_semantics = [#tpu.dimension_semantics<parallel>], iteration_bounds = array<i64: 2>, scalar_prefetch = 0 : i64, scratch_operands = 1 : i64, tpu.core_type = #tpu.core_type<tc>, window_params = [{transform_indices = @transform_0, window_bounds = array<i64: 1, 8, 32>}, {transform_indices = @transform_1, window_bounds = array<i64: 1, 1, 8>}, {pipeline_mode = #tpu.pipeline_mode<synchronous>, transform_indices = @transform_2, window_bounds = array<i64: 1, 32>}, {pipeline_mode = #tpu.pipeline_mode<synchronous>, transform_indices = @transform_3, window_bounds = array<i64: 1, 32>}, {pipeline_mode = #tpu.pipeline_mode<synchronous>, transform_indices = @transform_4, window_bounds = array<i64: 2, 32, 96>}, {pipeline_mode = #tpu.pipeline_mode<synchronous>, transform_indices = @transform_5, window_bounds = array<i64: 2, 1, 96>}, {pipeline_mode = #tpu.pipeline_mode<synchronous>, transform_indices = @transform_6, window_bounds = array<i64: 2, 32, 32>}, {pipeline_mode = #tpu.pipeline_mode<synchronous>, transform_indices = @transform_7, window_bounds = array<i64: 2, 1, 32>}, {pipeline_mode = #tpu.pipeline_mode<synchronous>, transform_indices = @transform_8, window_bounds = array<i64: 2, 1, 32>}, {pipeline_mode = #tpu.pipeline_mode<synchronous>, transform_indices = @transform_9, window_bounds = array<i64: 2, 1, 32>}, {pipeline_mode = #tpu.pipeline_mode<synchronous>, transform_indices = @transform_10, window_bounds = array<i64: 2, 32, 64>}, {pipeline_mode = #tpu.pipeline_mode<synchronous>, transform_indices = @transform_11, window_bounds = array<i64: 2, 1, 64>}, {pipeline_mode = #tpu.pipeline_mode<synchronous>, transform_indices = @transform_12, window_bounds = array<i64: 2, 64, 32>}, {pipeline_mode = #tpu.pipeline_mode<synchronous>, transform_indices = @transform_13, window_bounds = array<i64: 2, 1, 32>}, {pipeline_mode = #tpu.pipeline_mode<synchronous>, transform_indices = @transform_14, window_bounds = array<i64: 2, 1, 32>}, {pipeline_mode = #tpu.pipeline_mode<synchronous>, transform_indices = @transform_15, window_bounds = array<i64: 2, 1, 32>}, {pipeline_mode = #tpu.pipeline_mode<synchronous>, transform_indices = @transform_16, window_bounds = array<i64: 32, 32>}, {pipeline_mode = #tpu.pipeline_mode<synchronous>, transform_indices = @transform_17, window_bounds = array<i64: 1, 32>}, {pipeline_mode = #tpu.pipeline_mode<synchronous>, transform_indices = @transform_18, window_bounds = array<i64: 32, 3>}, {pipeline_mode = #tpu.pipeline_mode<synchronous>, transform_indices = @transform_19, window_bounds = array<i64: 1, 3>}, {transform_indices = @transform_20, window_bounds = array<i64: 1, 1, 3>}]} {
    %c0 = arith.constant 0 : index
    %c0_0 = arith.constant 0 : index
    %c0_1 = arith.constant 0 : index
    %0 = vector.load %arg1[%c0, %c0_0, %c0_1] : memref<1x8x32xf32, #tpu.memory_space<vmem>>, vector<1x8x32xf32>
    %1 = vector.shape_cast %0 : vector<1x8x32xf32> to vector<8x32xf32>
    %c0_2 = arith.constant 0 : index
    %c0_3 = arith.constant 0 : index
    %2 = vector.load %arg3[%c0_2, %c0_3] : memref<1x32xf32, #tpu.memory_space<vmem>>, vector<1x32xf32>
    %c0_4 = arith.constant 0 : index
    %c0_5 = arith.constant 0 : index
    %3 = vector.load %arg4[%c0_4, %c0_5] : memref<1x32xf32, #tpu.memory_space<vmem>>, vector<1x32xf32>
    %cst = arith.constant dense<0.000000e+00> : vector<8xf32>
    %4 = vector.multi_reduction <add>, %1, %cst [1] : vector<8x32xf32> to vector<8xf32>
    %5 = vector.shape_cast %4 : vector<8xf32> to vector<8x1xf32>
    %cst_6 = arith.constant 3.200000e+01 : f32
    %6 = vector.broadcast %cst_6 : f32 to vector<8x1xf32>
    %7 = arith.divf %5, %6 : vector<8x1xf32>
    %8 = vector.broadcast %7 : vector<8x1xf32> to vector<8x32xf32>
    %9 = arith.subf %1, %8 : vector<8x32xf32>
    %10 = arith.mulf %9, %9 : vector<8x32xf32>
    %cst_7 = arith.constant dense<0.000000e+00> : vector<8xf32>
    %11 = vector.multi_reduction <add>, %10, %cst_7 [1] : vector<8x32xf32> to vector<8xf32>
    %12 = vector.shape_cast %11 : vector<8xf32> to vector<8x1xf32>
    %cst_8 = arith.constant 3.200000e+01 : f32
    %13 = vector.broadcast %cst_8 : f32 to vector<8x1xf32>
    %14 = arith.divf %12, %13 : vector<8x1xf32>
    %cst_9 = arith.constant 9.99999996E-13 : f32
    %15 = vector.broadcast %cst_9 : f32 to vector<8x1xf32>
    %16 = arith.addf %14, %15 : vector<8x1xf32>
    %17 = math.rsqrt %16 : vector<8x1xf32>
    %18 = vector.broadcast %17 : vector<8x1xf32> to vector<8x32xf32>
    %19 = arith.mulf %9, %18 : vector<8x32xf32>
    %20 = vector.broadcast %2 : vector<1x32xf32> to vector<8x32xf32>
    %21 = arith.mulf %19, %20 : vector<8x32xf32>
    %22 = vector.broadcast %3 : vector<1x32xf32> to vector<8x32xf32>
    %23 = arith.addf %21, %22 : vector<8x32xf32>
    %c0_10 = arith.constant 0 : index
    %c0_11 = arith.constant 0 : index
    %c0_12 = arith.constant 0 : index
    %24 = vector.load %arg2[%c0_10, %c0_11, %c0_12] : memref<1x1x8xf32, #tpu.memory_space<vmem>>, vector<1x1x8xf32>
    %25 = vector.shape_cast %24 : vector<1x1x8xf32> to vector<1x8xf32>
    %c0_13 = arith.constant 0 : index
    %c0_14 = arith.constant 0 : index
    %c0_15 = arith.constant 0 : index
    %26 = vector.load %arg5[%c0_13, %c0_14, %c0_15] : memref<2x32x96xbf16, #tpu.memory_space<vmem>>, vector<1x32x96xbf16>
    %27 = vector.shape_cast %26 : vector<1x32x96xbf16> to vector<32x96xbf16>
    %28 = arith.truncf %23 : vector<8x32xf32> to vector<8x32xbf16>
    %cst_16 = arith.constant dense<0.000000e+00> : vector<8x96xf32>
    %29 = tpu.matmul %28, %27, %cst_16 {dimension_numbers = #tpu.dot_dimension_numbers<[1], [0], [0], [1], [0, 0, 1, 1], [], []>} : vector<8x32xbf16>, vector<32x96xbf16>, vector<8x96xf32> -> vector<8x96xf32>
    %c0_17 = arith.constant 0 : index
    %c0_18 = arith.constant 0 : index
    %c0_19 = arith.constant 0 : index
    %30 = vector.load %arg6[%c0_17, %c0_18, %c0_19] : memref<2x1x96xf32, #tpu.memory_space<vmem>>, vector<1x1x96xf32>
    %31 = vector.shape_cast %30 : vector<1x1x96xf32> to vector<1x96xf32>
    %32 = vector.broadcast %31 : vector<1x96xf32> to vector<8x96xf32>
    %33 = arith.addf %29, %32 : vector<8x96xf32>
    %34 = vector.extract_strided_slice %33 {offsets = [0, 0], sizes = [8, 32], strides = [1, 1]} : vector<8x96xf32> to vector<8x32xf32>
    %35 = vector.extract_strided_slice %33 {offsets = [0, 32], sizes = [8, 32], strides = [1, 1]} : vector<8x96xf32> to vector<8x32xf32>
    %36 = vector.extract_strided_slice %33 {offsets = [0, 64], sizes = [8, 32], strides = [1, 1]} : vector<8x96xf32> to vector<8x32xf32>
    %37 = vector.extract_strided_slice %34 {offsets = [0, 0], sizes = [8, 8], strides = [1, 1]} : vector<8x32xf32> to vector<8x8xf32>
    %38 = arith.truncf %37 : vector<8x8xf32> to vector<8x8xbf16>
    %39 = vector.extract_strided_slice %35 {offsets = [0, 0], sizes = [8, 8], strides = [1, 1]} : vector<8x32xf32> to vector<8x8xf32>
    %40 = arith.truncf %39 : vector<8x8xf32> to vector<8x8xbf16>
    %cst_20 = arith.constant dense<0.000000e+00> : vector<8x8xf32>
    %41 = tpu.matmul %38, %40, %cst_20 {dimension_numbers = #tpu.dot_dimension_numbers<[1], [1], [0], [0], [0, 0, 1, 0], [], []>} : vector<8x8xbf16>, vector<8x8xbf16>, vector<8x8xf32> -> vector<8x8xf32>
    %42 = vector.broadcast %25 : vector<1x8xf32> to vector<8x8xf32>
    %43 = arith.addf %41, %42 : vector<8x8xf32>
    %cst_21 = arith.constant dense<0xFF800000> : vector<8xf32>
    %44 = vector.multi_reduction <maximumf>, %43, %cst_21 [1] : vector<8x8xf32> to vector<8xf32>
    %45 = vector.shape_cast %44 : vector<8xf32> to vector<8x1xf32>
    %46 = vector.broadcast %45 : vector<8x1xf32> to vector<8x8xf32>
    %47 = arith.subf %43, %46 : vector<8x8xf32>
    %48 = math.exp %47 : vector<8x8xf32>
    %cst_22 = arith.constant dense<0.000000e+00> : vector<8xf32>
    %49 = vector.multi_reduction <add>, %48, %cst_22 [1] : vector<8x8xf32> to vector<8xf32>
    %50 = vector.shape_cast %49 : vector<8xf32> to vector<8x1xf32>
    %51 = tpu.reciprocal %50 {approx = true} : vector<8x1xf32> -> vector<8x1xf32>
    %52 = vector.broadcast %51 : vector<8x1xf32> to vector<8x8xf32>
    %53 = arith.mulf %48, %52 : vector<8x8xf32>
    %54 = arith.truncf %53 : vector<8x8xf32> to vector<8x8xbf16>
    %55 = vector.extract_strided_slice %36 {offsets = [0, 0], sizes = [8, 8], strides = [1, 1]} : vector<8x32xf32> to vector<8x8xf32>
    %56 = arith.truncf %55 : vector<8x8xf32> to vector<8x8xbf16>
    %cst_23 = arith.constant dense<0.000000e+00> : vector<8x8xf32>
    %57 = tpu.matmul %54, %56, %cst_23 {dimension_numbers = #tpu.dot_dimension_numbers<[1], [0], [0], [1], [0, 0, 1, 1], [], []>} : vector<8x8xbf16>, vector<8x8xbf16>, vector<8x8xf32> -> vector<8x8xf32>
    %c0_24 = arith.constant 0 : index
    %c0_25 = arith.constant 0 : index
    %58 = vector.load %arg22[%c0_24, %c0_25] : memref<8x32xf32, #tpu.memory_space<vmem>>, vector<8x8xf32>
    tpu.vector_store %arg22[%c0_24, %c0_25], %57 {strides = array<i32>} : memref<8x32xf32, #tpu.memory_space<vmem>>, vector<8x8xf32>,
    %59 = vector.extract_strided_slice %34 {offsets = [0, 8], sizes = [8, 8], strides = [1, 1]} : vector<8x32xf32> to vector<8x8xf32>
    %60 = arith.truncf %59 : vector<8x8xf32> to vector<8x8xbf16>
    %61 = vector.extract_strided_slice %35 {offsets = [0, 8], sizes = [8, 8], strides = [1, 1]} : vector<8x32xf32> to vector<8x8xf32>
    %62 = arith.truncf %61 : vector<8x8xf32> to vector<8x8xbf16>
    %cst_26 = arith.constant dense<0.000000e+00> : vector<8x8xf32>
    %63 = tpu.matmul %60, %62, %cst_26 {dimension_numbers = #tpu.dot_dimension_numbers<[1], [1], [0], [0], [0, 0, 1, 0], [], []>} : vector<8x8xbf16>, vector<8x8xbf16>, vector<8x8xf32> -> vector<8x8xf32>
    %64 = vector.broadcast %25 : vector<1x8xf32> to vector<8x8xf32>
    %65 = arith.addf %63, %64 : vector<8x8xf32>
    %cst_27 = arith.constant dense<0xFF800000> : vector<8xf32>
    %66 = vector.multi_reduction <maximumf>, %65, %cst_27 [1] : vector<8x8xf32> to vector<8xf32>
    %67 = vector.shape_cast %66 : vector<8xf32> to vector<8x1xf32>
    %68 = vector.broadcast %67 : vector<8x1xf32> to vector<8x8xf32>
    %69 = arith.subf %65, %68 : vector<8x8xf32>
    %70 = math.exp %69 : vector<8x8xf32>
    %cst_28 = arith.constant dense<0.000000e+00> : vector<8xf32>
    %71 = vector.multi_reduction <add>, %70, %cst_28 [1] : vector<8x8xf32> to vector<8xf32>
    %72 = vector.shape_cast %71 : vector<8xf32> to vector<8x1xf32>
    %73 = tpu.reciprocal %72 {approx = true} : vector<8x1xf32> -> vector<8x1xf32>
    %74 = vector.broadcast %73 : vector<8x1xf32> to vector<8x8xf32>
    %75 = arith.mulf %70, %74 : vector<8x8xf32>
    %76 = arith.truncf %75 : vector<8x8xf32> to vector<8x8xbf16>
    %77 = vector.extract_strided_slice %36 {offsets = [0, 8], sizes = [8, 8], strides = [1, 1]} : vector<8x32xf32> to vector<8x8xf32>
    %78 = arith.truncf %77 : vector<8x8xf32> to vector<8x8xbf16>
    %cst_29 = arith.constant dense<0.000000e+00> : vector<8x8xf32>
    %79 = tpu.matmul %76, %78, %cst_29 {dimension_numbers = #tpu.dot_dimension_numbers<[1], [0], [0], [1], [0, 0, 1, 1], [], []>} : vector<8x8xbf16>, vector<8x8xbf16>, vector<8x8xf32> -> vector<8x8xf32>
    %c0_30 = arith.constant 0 : index
    %c8 = arith.constant 8 : index
    %80 = vector.load %arg22[%c0_30, %c8] : memref<8x32xf32, #tpu.memory_space<vmem>>, vector<8x8xf32>
    tpu.vector_store %arg22[%c0_30, %c8], %79 {strides = array<i32>} : memref<8x32xf32, #tpu.memory_space<vmem>>, vector<8x8xf32>,
    %81 = vector.extract_strided_slice %34 {offsets = [0, 16], sizes = [8, 8], strides = [1, 1]} : vector<8x32xf32> to vector<8x8xf32>
    %82 = arith.truncf %81 : vector<8x8xf32> to vector<8x8xbf16>
    %83 = vector.extract_strided_slice %35 {offsets = [0, 16], sizes = [8, 8], strides = [1, 1]} : vector<8x32xf32> to vector<8x8xf32>
    %84 = arith.truncf %83 : vector<8x8xf32> to vector<8x8xbf16>
    %cst_31 = arith.constant dense<0.000000e+00> : vector<8x8xf32>
    %85 = tpu.matmul %82, %84, %cst_31 {dimension_numbers = #tpu.dot_dimension_numbers<[1], [1], [0], [0], [0, 0, 1, 0], [], []>} : vector<8x8xbf16>, vector<8x8xbf16>, vector<8x8xf32> -> vector<8x8xf32>
    %86 = vector.broadcast %25 : vector<1x8xf32> to vector<8x8xf32>
    %87 = arith.addf %85, %86 : vector<8x8xf32>
    %cst_32 = arith.constant dense<0xFF800000> : vector<8xf32>
    %88 = vector.multi_reduction <maximumf>, %87, %cst_32 [1] : vector<8x8xf32> to vector<8xf32>
    %89 = vector.shape_cast %88 : vector<8xf32> to vector<8x1xf32>
    %90 = vector.broadcast %89 : vector<8x1xf32> to vector<8x8xf32>
    %91 = arith.subf %87, %90 : vector<8x8xf32>
    %92 = math.exp %91 : vector<8x8xf32>
    %cst_33 = arith.constant dense<0.000000e+00> : vector<8xf32>
    %93 = vector.multi_reduction <add>, %92, %cst_33 [1] : vector<8x8xf32> to vector<8xf32>
    %94 = vector.shape_cast %93 : vector<8xf32> to vector<8x1xf32>
    %95 = tpu.reciprocal %94 {approx = true} : vector<8x1xf32> -> vector<8x1xf32>
    %96 = vector.broadcast %95 : vector<8x1xf32> to vector<8x8xf32>
    %97 = arith.mulf %92, %96 : vector<8x8xf32>
    %98 = arith.truncf %97 : vector<8x8xf32> to vector<8x8xbf16>
    %99 = vector.extract_strided_slice %36 {offsets = [0, 16], sizes = [8, 8], strides = [1, 1]} : vector<8x32xf32> to vector<8x8xf32>
    %100 = arith.truncf %99 : vector<8x8xf32> to vector<8x8xbf16>
    %cst_34 = arith.constant dense<0.000000e+00> : vector<8x8xf32>
    %101 = tpu.matmul %98, %100, %cst_34 {dimension_numbers = #tpu.dot_dimension_numbers<[1], [0], [0], [1], [0, 0, 1, 1], [], []>} : vector<8x8xbf16>, vector<8x8xbf16>, vector<8x8xf32> -> vector<8x8xf32>
    %c0_35 = arith.constant 0 : index
    %c16 = arith.constant 16 : index
    %102 = vector.load %arg22[%c0_35, %c16] : memref<8x32xf32, #tpu.memory_space<vmem>>, vector<8x8xf32>
    tpu.vector_store %arg22[%c0_35, %c16], %101 {strides = array<i32>} : memref<8x32xf32, #tpu.memory_space<vmem>>, vector<8x8xf32>,
    %103 = vector.extract_strided_slice %34 {offsets = [0, 24], sizes = [8, 8], strides = [1, 1]} : vector<8x32xf32> to vector<8x8xf32>
    %104 = arith.truncf %103 : vector<8x8xf32> to vector<8x8xbf16>
    %105 = vector.extract_strided_slice %35 {offsets = [0, 24], sizes = [8, 8], strides = [1, 1]} : vector<8x32xf32> to vector<8x8xf32>
    %106 = arith.truncf %105 : vector<8x8xf32> to vector<8x8xbf16>
    %cst_36 = arith.constant dense<0.000000e+00> : vector<8x8xf32>
    %107 = tpu.matmul %104, %106, %cst_36 {dimension_numbers = #tpu.dot_dimension_numbers<[1], [1], [0], [0], [0, 0, 1, 0], [], []>} : vector<8x8xbf16>, vector<8x8xbf16>, vector<8x8xf32> -> vector<8x8xf32>
    %108 = vector.broadcast %25 : vector<1x8xf32> to vector<8x8xf32>
    %109 = arith.addf %107, %108 : vector<8x8xf32>
    %cst_37 = arith.constant dense<0xFF800000> : vector<8xf32>
    %110 = vector.multi_reduction <maximumf>, %109, %cst_37 [1] : vector<8x8xf32> to vector<8xf32>
    %111 = vector.shape_cast %110 : vector<8xf32> to vector<8x1xf32>
    %112 = vector.broadcast %111 : vector<8x1xf32> to vector<8x8xf32>
    %113 = arith.subf %109, %112 : vector<8x8xf32>
    %114 = math.exp %113 : vector<8x8xf32>
    %cst_38 = arith.constant dense<0.000000e+00> : vector<8xf32>
    %115 = vector.multi_reduction <add>, %114, %cst_38 [1] : vector<8x8xf32> to vector<8xf32>
    %116 = vector.shape_cast %115 : vector<8xf32> to vector<8x1xf32>
    %117 = tpu.reciprocal %116 {approx = true} : vector<8x1xf32> -> vector<8x1xf32>
    %118 = vector.broadcast %117 : vector<8x1xf32> to vector<8x8xf32>
    %119 = arith.mulf %114, %118 : vector<8x8xf32>
    %120 = arith.truncf %119 : vector<8x8xf32> to vector<8x8xbf16>
    %121 = vector.extract_strided_slice %36 {offsets = [0, 24], sizes = [8, 8], strides = [1, 1]} : vector<8x32xf32> to vector<8x8xf32>
    %122 = arith.truncf %121 : vector<8x8xf32> to vector<8x8xbf16>
    %cst_39 = arith.constant dense<0.000000e+00> : vector<8x8xf32>
    %123 = tpu.matmul %120, %122, %cst_39 {dimension_numbers = #tpu.dot_dimension_numbers<[1], [0], [0], [1], [0, 0, 1, 1], [], []>} : vector<8x8xbf16>, vector<8x8xbf16>, vector<8x8xf32> -> vector<8x8xf32>
    %c0_40 = arith.constant 0 : index
    %c24 = arith.constant 24 : index
    %124 = vector.load %arg22[%c0_40, %c24] : memref<8x32xf32, #tpu.memory_space<vmem>>, vector<8x8xf32>
    tpu.vector_store %arg22[%c0_40, %c24], %123 {strides = array<i32>} : memref<8x32xf32, #tpu.memory_space<vmem>>, vector<8x8xf32>,
    %c0_41 = arith.constant 0 : index
    %c0_42 = arith.constant 0 : index
    %125 = vector.load %arg22[%c0_41, %c0_42] : memref<8x32xf32, #tpu.memory_space<vmem>>, vector<8x32xf32>
    %c0_43 = arith.constant 0 : index
    %c0_44 = arith.constant 0 : index
    %c0_45 = arith.constant 0 : index
    %126 = vector.load %arg7[%c0_43, %c0_44, %c0_45] : memref<2x32x32xbf16, #tpu.memory_space<vmem>>, vector<1x32x32xbf16>
    %127 = vector.shape_cast %126 : vector<1x32x32xbf16> to vector<32x32xbf16>
    %128 = arith.truncf %125 : vector<8x32xf32> to vector<8x32xbf16>
    %cst_46 = arith.constant dense<0.000000e+00> : vector<8x32xf32>
    %129 = tpu.matmul %128, %127, %cst_46 {dimension_numbers = #tpu.dot_dimension_numbers<[1], [0], [0], [1], [0, 0, 1, 1], [], []>} : vector<8x32xbf16>, vector<32x32xbf16>, vector<8x32xf32> -> vector<8x32xf32>
    %c0_47 = arith.constant 0 : index
    %c0_48 = arith.constant 0 : index
    %c0_49 = arith.constant 0 : index
    %130 = vector.load %arg8[%c0_47, %c0_48, %c0_49] : memref<2x1x32xf32, #tpu.memory_space<vmem>>, vector<1x1x32xf32>
    %131 = vector.shape_cast %130 : vector<1x1x32xf32> to vector<1x32xf32>
    %132 = vector.broadcast %131 : vector<1x32xf32> to vector<8x32xf32>
    %133 = arith.addf %129, %132 : vector<8x32xf32>
    %134 = arith.addf %133, %23 : vector<8x32xf32>
    %c0_50 = arith.constant 0 : index
    %c0_51 = arith.constant 0 : index
    %c0_52 = arith.constant 0 : index
    %135 = vector.load %arg9[%c0_50, %c0_51, %c0_52] : memref<2x1x32xf32, #tpu.memory_space<vmem>>, vector<1x1x32xf32>
    %136 = vector.shape_cast %135 : vector<1x1x32xf32> to vector<1x32xf32>
    %c0_53 = arith.constant 0 : index
    %c0_54 = arith.constant 0 : index
    %c0_55 = arith.constant 0 : index
    %137 = vector.load %arg10[%c0_53, %c0_54, %c0_55] : memref<2x1x32xf32, #tpu.memory_space<vmem>>, vector<1x1x32xf32>
    %138 = vector.shape_cast %137 : vector<1x1x32xf32> to vector<1x32xf32>
    %cst_56 = arith.constant dense<0.000000e+00> : vector<8xf32>
    %139 = vector.multi_reduction <add>, %134, %cst_56 [1] : vector<8x32xf32> to vector<8xf32>
    %140 = vector.shape_cast %139 : vector<8xf32> to vector<8x1xf32>
    %cst_57 = arith.constant 3.200000e+01 : f32
    %141 = vector.broadcast %cst_57 : f32 to vector<8x1xf32>
    %142 = arith.divf %140, %141 : vector<8x1xf32>
    %143 = vector.broadcast %142 : vector<8x1xf32> to vector<8x32xf32>
    %144 = arith.subf %134, %143 : vector<8x32xf32>
    %145 = arith.mulf %144, %144 : vector<8x32xf32>
    %cst_58 = arith.constant dense<0.000000e+00> : vector<8xf32>
    %146 = vector.multi_reduction <add>, %145, %cst_58 [1] : vector<8x32xf32> to vector<8xf32>
    %147 = vector.shape_cast %146 : vector<8xf32> to vector<8x1xf32>
    %cst_59 = arith.constant 3.200000e+01 : f32
    %148 = vector.broadcast %cst_59 : f32 to vector<8x1xf32>
    %149 = arith.divf %147, %148 : vector<8x1xf32>
    %cst_60 = arith.constant 9.99999996E-13 : f32
    %150 = vector.broadcast %cst_60 : f32 to vector<8x1xf32>
    %151 = arith.addf %149, %150 : vector<8x1xf32>
    %152 = math.rsqrt %151 : vector<8x1xf32>
    %153 = vector.broadcast %152 : vector<8x1xf32> to vector<8x32xf32>
    %154 = arith.mulf %144, %153 : vector<8x32xf32>
    %155 = vector.broadcast %136 : vector<1x32xf32> to vector<8x32xf32>
    %156 = arith.mulf %154, %155 : vector<8x32xf32>
    %157 = vector.broadcast %138 : vector<1x32xf32> to vector<8x32xf32>
    %158 = arith.addf %156, %157 : vector<8x32xf32>
    %c0_61 = arith.constant 0 : index
    %c0_62 = arith.constant 0 : index
    %c0_63 = arith.constant 0 : index
    %159 = vector.load %arg11[%c0_61, %c0_62, %c0_63] : memref<2x32x64xbf16, #tpu.memory_space<vmem>>, vector<1x32x64xbf16>
    %160 = vector.shape_cast %159 : vector<1x32x64xbf16> to vector<32x64xbf16>
    %161 = arith.truncf %158 : vector<8x32xf32> to vector<8x32xbf16>
    %cst_64 = arith.constant dense<0.000000e+00> : vector<8x64xf32>
    %162 = tpu.matmul %161, %160, %cst_64 {dimension_numbers = #tpu.dot_dimension_numbers<[1], [0], [0], [1], [0, 0, 1, 1], [], []>} : vector<8x32xbf16>, vector<32x64xbf16>, vector<8x64xf32> -> vector<8x64xf32>
    %c0_65 = arith.constant 0 : index
    %c0_66 = arith.constant 0 : index
    %c0_67 = arith.constant 0 : index
    %163 = vector.load %arg12[%c0_65, %c0_66, %c0_67] : memref<2x1x64xf32, #tpu.memory_space<vmem>>, vector<1x1x64xf32>
    %164 = vector.shape_cast %163 : vector<1x1x64xf32> to vector<1x64xf32>
    %165 = vector.broadcast %164 : vector<1x64xf32> to vector<8x64xf32>
    %166 = arith.addf %162, %165 : vector<8x64xf32>
    %cst_68 = arith.constant 5.000000e-01 : f32
    %167 = vector.broadcast %cst_68 : f32 to vector<8x64xf32>
    %168 = arith.mulf %167, %166 : vector<8x64xf32>
    %cst_69 = arith.constant 4.471500e-02 : f32
    %169 = vector.broadcast %cst_69 : f32 to vector<8x64xf32>
    %170 = arith.mulf %169, %166 : vector<8x64xf32>
    %171 = arith.mulf %170, %166 : vector<8x64xf32>
    %172 = arith.mulf %171, %166 : vector<8x64xf32>
    %173 = arith.addf %166, %172 : vector<8x64xf32>
    %cst_70 = arith.constant 0.797884583 : f32
    %174 = vector.broadcast %cst_70 : f32 to vector<8x64xf32>
    %175 = arith.mulf %174, %173 : vector<8x64xf32>
    %176 = math.tanh %175 : vector<8x64xf32>
    %cst_71 = arith.constant 1.000000e+00 : f32
    %177 = vector.broadcast %cst_71 : f32 to vector<8x64xf32>
    %178 = arith.addf %177, %176 : vector<8x64xf32>
    %179 = arith.mulf %168, %178 : vector<8x64xf32>
    %c0_72 = arith.constant 0 : index
    %c0_73 = arith.constant 0 : index
    %c0_74 = arith.constant 0 : index
    %180 = vector.load %arg13[%c0_72, %c0_73, %c0_74] : memref<2x64x32xbf16, #tpu.memory_space<vmem>>, vector<1x64x32xbf16>
    %181 = vector.shape_cast %180 : vector<1x64x32xbf16> to vector<64x32xbf16>
    %182 = arith.truncf %179 : vector<8x64xf32> to vector<8x64xbf16>
    %cst_75 = arith.constant dense<0.000000e+00> : vector<8x32xf32>
    %183 = tpu.matmul %182, %181, %cst_75 {dimension_numbers = #tpu.dot_dimension_numbers<[1], [0], [0], [1], [0, 0, 1, 1], [], []>} : vector<8x64xbf16>, vector<64x32xbf16>, vector<8x32xf32> -> vector<8x32xf32>
    %c0_76 = arith.constant 0 : index
    %c0_77 = arith.constant 0 : index
    %c0_78 = arith.constant 0 : index
    %184 = vector.load %arg14[%c0_76, %c0_77, %c0_78] : memref<2x1x32xf32, #tpu.memory_space<vmem>>, vector<1x1x32xf32>
    %185 = vector.shape_cast %184 : vector<1x1x32xf32> to vector<1x32xf32>
    %186 = vector.broadcast %185 : vector<1x32xf32> to vector<8x32xf32>
    %187 = arith.addf %183, %186 : vector<8x32xf32>
    %188 = arith.addf %187, %158 : vector<8x32xf32>
    %c0_79 = arith.constant 0 : index
    %c0_80 = arith.constant 0 : index
    %c0_81 = arith.constant 0 : index
    %189 = vector.load %arg15[%c0_79, %c0_80, %c0_81] : memref<2x1x32xf32, #tpu.memory_space<vmem>>, vector<1x1x32xf32>
    %190 = vector.shape_cast %189 : vector<1x1x32xf32> to vector<1x32xf32>
    %c0_82 = arith.constant 0 : index
    %c0_83 = arith.constant 0 : index
    %c0_84 = arith.constant 0 : index
    %191 = vector.load %arg16[%c0_82, %c0_83, %c0_84] : memref<2x1x32xf32, #tpu.memory_space<vmem>>, vector<1x1x32xf32>
    %192 = vector.shape_cast %191 : vector<1x1x32xf32> to vector<1x32xf32>
    %cst_85 = arith.constant dense<0.000000e+00> : vector<8xf32>
    %193 = vector.multi_reduction <add>, %188, %cst_85 [1] : vector<8x32xf32> to vector<8xf32>
    %194 = vector.shape_cast %193 : vector<8xf32> to vector<8x1xf32>
    %cst_86 = arith.constant 3.200000e+01 : f32
    %195 = vector.broadcast %cst_86 : f32 to vector<8x1xf32>
    %196 = arith.divf %194, %195 : vector<8x1xf32>
    %197 = vector.broadcast %196 : vector<8x1xf32> to vector<8x32xf32>
    %198 = arith.subf %188, %197 : vector<8x32xf32>
    %199 = arith.mulf %198, %198 : vector<8x32xf32>
    %cst_87 = arith.constant dense<0.000000e+00> : vector<8xf32>
    %200 = vector.multi_reduction <add>, %199, %cst_87 [1] : vector<8x32xf32> to vector<8xf32>
    %201 = vector.shape_cast %200 : vector<8xf32> to vector<8x1xf32>
    %cst_88 = arith.constant 3.200000e+01 : f32
    %202 = vector.broadcast %cst_88 : f32 to vector<8x1xf32>
    %203 = arith.divf %201, %202 : vector<8x1xf32>
    %cst_89 = arith.constant 9.99999996E-13 : f32
    %204 = vector.broadcast %cst_89 : f32 to vector<8x1xf32>
    %205 = arith.addf %203, %204 : vector<8x1xf32>
    %206 = math.rsqrt %205 : vector<8x1xf32>
    %207 = vector.broadcast %206 : vector<8x1xf32> to vector<8x32xf32>
    %208 = arith.mulf %198, %207 : vector<8x32xf32>
    %209 = vector.broadcast %190 : vector<1x32xf32> to vector<8x32xf32>
    %210 = arith.mulf %208, %209 : vector<8x32xf32>
    %211 = vector.broadcast %192 : vector<1x32xf32> to vector<8x32xf32>
    %212 = arith.addf %210, %211 : vector<8x32xf32>
    %c1 = arith.constant 1 : index
    %c0_90 = arith.constant 0 : index
    %c0_91 = arith.constant 0 : index
    %213 = vector.load %arg5[%c1, %c0_90, %c0_91] : memref<2x32x96xbf16, #tpu.memory_space<vmem>>, vector<1x32x96xbf16>
    %214 = vector.shape_cast %213 : vector<1x32x96xbf16> to vector<32x96xbf16>
    %215 = arith.truncf %212 : vector<8x32xf32> to vector<8x32xbf16>
    %cst_92 = arith.constant dense<0.000000e+00> : vector<8x96xf32>
    %216 = tpu.matmul %215, %214, %cst_92 {dimension_numbers = #tpu.dot_dimension_numbers<[1], [0], [0], [1], [0, 0, 1, 1], [], []>} : vector<8x32xbf16>, vector<32x96xbf16>, vector<8x96xf32> -> vector<8x96xf32>
    %c1_93 = arith.constant 1 : index
    %c0_94 = arith.constant 0 : index
    %c0_95 = arith.constant 0 : index
    %217 = vector.load %arg6[%c1_93, %c0_94, %c0_95] : memref<2x1x96xf32, #tpu.memory_space<vmem>>, vector<1x1x96xf32>
    %218 = vector.shape_cast %217 : vector<1x1x96xf32> to vector<1x96xf32>
    %219 = vector.broadcast %218 : vector<1x96xf32> to vector<8x96xf32>
    %220 = arith.addf %216, %219 : vector<8x96xf32>
    %221 = vector.extract_strided_slice %220 {offsets = [0, 0], sizes = [8, 32], strides = [1, 1]} : vector<8x96xf32> to vector<8x32xf32>
    %222 = vector.extract_strided_slice %220 {offsets = [0, 32], sizes = [8, 32], strides = [1, 1]} : vector<8x96xf32> to vector<8x32xf32>
    %223 = vector.extract_strided_slice %220 {offsets = [0, 64], sizes = [8, 32], strides = [1, 1]} : vector<8x96xf32> to vector<8x32xf32>
    %224 = vector.extract_strided_slice %221 {offsets = [0, 0], sizes = [8, 8], strides = [1, 1]} : vector<8x32xf32> to vector<8x8xf32>
    %225 = arith.truncf %224 : vector<8x8xf32> to vector<8x8xbf16>
    %226 = vector.extract_strided_slice %222 {offsets = [0, 0], sizes = [8, 8], strides = [1, 1]} : vector<8x32xf32> to vector<8x8xf32>
    %227 = arith.truncf %226 : vector<8x8xf32> to vector<8x8xbf16>
    %cst_96 = arith.constant dense<0.000000e+00> : vector<8x8xf32>
    %228 = tpu.matmul %225, %227, %cst_96 {dimension_numbers = #tpu.dot_dimension_numbers<[1], [1], [0], [0], [0, 0, 1, 0], [], []>} : vector<8x8xbf16>, vector<8x8xbf16>, vector<8x8xf32> -> vector<8x8xf32>
    %229 = vector.broadcast %25 : vector<1x8xf32> to vector<8x8xf32>
    %230 = arith.addf %228, %229 : vector<8x8xf32>
    %cst_97 = arith.constant dense<0xFF800000> : vector<8xf32>
    %231 = vector.multi_reduction <maximumf>, %230, %cst_97 [1] : vector<8x8xf32> to vector<8xf32>
    %232 = vector.shape_cast %231 : vector<8xf32> to vector<8x1xf32>
    %233 = vector.broadcast %232 : vector<8x1xf32> to vector<8x8xf32>
    %234 = arith.subf %230, %233 : vector<8x8xf32>
    %235 = math.exp %234 : vector<8x8xf32>
    %cst_98 = arith.constant dense<0.000000e+00> : vector<8xf32>
    %236 = vector.multi_reduction <add>, %235, %cst_98 [1] : vector<8x8xf32> to vector<8xf32>
    %237 = vector.shape_cast %236 : vector<8xf32> to vector<8x1xf32>
    %238 = tpu.reciprocal %237 {approx = true} : vector<8x1xf32> -> vector<8x1xf32>
    %239 = vector.broadcast %238 : vector<8x1xf32> to vector<8x8xf32>
    %240 = arith.mulf %235, %239 : vector<8x8xf32>
    %241 = arith.truncf %240 : vector<8x8xf32> to vector<8x8xbf16>
    %242 = vector.extract_strided_slice %223 {offsets = [0, 0], sizes = [8, 8], strides = [1, 1]} : vector<8x32xf32> to vector<8x8xf32>
    %243 = arith.truncf %242 : vector<8x8xf32> to vector<8x8xbf16>
    %cst_99 = arith.constant dense<0.000000e+00> : vector<8x8xf32>
    %244 = tpu.matmul %241, %243, %cst_99 {dimension_numbers = #tpu.dot_dimension_numbers<[1], [0], [0], [1], [0, 0, 1, 1], [], []>} : vector<8x8xbf16>, vector<8x8xbf16>, vector<8x8xf32> -> vector<8x8xf32>
    %c0_100 = arith.constant 0 : index
    %c0_101 = arith.constant 0 : index
    %245 = vector.load %arg22[%c0_100, %c0_101] : memref<8x32xf32, #tpu.memory_space<vmem>>, vector<8x8xf32>
    tpu.vector_store %arg22[%c0_100, %c0_101], %244 {strides = array<i32>} : memref<8x32xf32, #tpu.memory_space<vmem>>, vector<8x8xf32>,
    %246 = vector.extract_strided_slice %221 {offsets = [0, 8], sizes = [8, 8], strides = [1, 1]} : vector<8x32xf32> to vector<8x8xf32>
    %247 = arith.truncf %246 : vector<8x8xf32> to vector<8x8xbf16>
    %248 = vector.extract_strided_slice %222 {offsets = [0, 8], sizes = [8, 8], strides = [1, 1]} : vector<8x32xf32> to vector<8x8xf32>
    %249 = arith.truncf %248 : vector<8x8xf32> to vector<8x8xbf16>
    %cst_102 = arith.constant dense<0.000000e+00> : vector<8x8xf32>
    %250 = tpu.matmul %247, %249, %cst_102 {dimension_numbers = #tpu.dot_dimension_numbers<[1], [1], [0], [0], [0, 0, 1, 0], [], []>} : vector<8x8xbf16>, vector<8x8xbf16>, vector<8x8xf32> -> vector<8x8xf32>
    %251 = vector.broadcast %25 : vector<1x8xf32> to vector<8x8xf32>
    %252 = arith.addf %250, %251 : vector<8x8xf32>
    %cst_103 = arith.constant dense<0xFF800000> : vector<8xf32>
    %253 = vector.multi_reduction <maximumf>, %252, %cst_103 [1] : vector<8x8xf32> to vector<8xf32>
    %254 = vector.shape_cast %253 : vector<8xf32> to vector<8x1xf32>
    %255 = vector.broadcast %254 : vector<8x1xf32> to vector<8x8xf32>
    %256 = arith.subf %252, %255 : vector<8x8xf32>
    %257 = math.exp %256 : vector<8x8xf32>
    %cst_104 = arith.constant dense<0.000000e+00> : vector<8xf32>
    %258 = vector.multi_reduction <add>, %257, %cst_104 [1] : vector<8x8xf32> to vector<8xf32>
    %259 = vector.shape_cast %258 : vector<8xf32> to vector<8x1xf32>
    %260 = tpu.reciprocal %259 {approx = true} : vector<8x1xf32> -> vector<8x1xf32>
    %261 = vector.broadcast %260 : vector<8x1xf32> to vector<8x8xf32>
    %262 = arith.mulf %257, %261 : vector<8x8xf32>
    %263 = arith.truncf %262 : vector<8x8xf32> to vector<8x8xbf16>
    %264 = vector.extract_strided_slice %223 {offsets = [0, 8], sizes = [8, 8], strides = [1, 1]} : vector<8x32xf32> to vector<8x8xf32>
    %265 = arith.truncf %264 : vector<8x8xf32> to vector<8x8xbf16>
    %cst_105 = arith.constant dense<0.000000e+00> : vector<8x8xf32>
    %266 = tpu.matmul %263, %265, %cst_105 {dimension_numbers = #tpu.dot_dimension_numbers<[1], [0], [0], [1], [0, 0, 1, 1], [], []>} : vector<8x8xbf16>, vector<8x8xbf16>, vector<8x8xf32> -> vector<8x8xf32>
    %c0_106 = arith.constant 0 : index
    %c8_107 = arith.constant 8 : index
    %267 = vector.load %arg22[%c0_106, %c8_107] : memref<8x32xf32, #tpu.memory_space<vmem>>, vector<8x8xf32>
    tpu.vector_store %arg22[%c0_106, %c8_107], %266 {strides = array<i32>} : memref<8x32xf32, #tpu.memory_space<vmem>>, vector<8x8xf32>,
    %268 = vector.extract_strided_slice %221 {offsets = [0, 16], sizes = [8, 8], strides = [1, 1]} : vector<8x32xf32> to vector<8x8xf32>
    %269 = arith.truncf %268 : vector<8x8xf32> to vector<8x8xbf16>
    %270 = vector.extract_strided_slice %222 {offsets = [0, 16], sizes = [8, 8], strides = [1, 1]} : vector<8x32xf32> to vector<8x8xf32>
    %271 = arith.truncf %270 : vector<8x8xf32> to vector<8x8xbf16>
    %cst_108 = arith.constant dense<0.000000e+00> : vector<8x8xf32>
    %272 = tpu.matmul %269, %271, %cst_108 {dimension_numbers = #tpu.dot_dimension_numbers<[1], [1], [0], [0], [0, 0, 1, 0], [], []>} : vector<8x8xbf16>, vector<8x8xbf16>, vector<8x8xf32> -> vector<8x8xf32>
    %273 = vector.broadcast %25 : vector<1x8xf32> to vector<8x8xf32>
    %274 = arith.addf %272, %273 : vector<8x8xf32>
    %cst_109 = arith.constant dense<0xFF800000> : vector<8xf32>
    %275 = vector.multi_reduction <maximumf>, %274, %cst_109 [1] : vector<8x8xf32> to vector<8xf32>
    %276 = vector.shape_cast %275 : vector<8xf32> to vector<8x1xf32>
    %277 = vector.broadcast %276 : vector<8x1xf32> to vector<8x8xf32>
    %278 = arith.subf %274, %277 : vector<8x8xf32>
    %279 = math.exp %278 : vector<8x8xf32>
    %cst_110 = arith.constant dense<0.000000e+00> : vector<8xf32>
    %280 = vector.multi_reduction <add>, %279, %cst_110 [1] : vector<8x8xf32> to vector<8xf32>
    %281 = vector.shape_cast %280 : vector<8xf32> to vector<8x1xf32>
    %282 = tpu.reciprocal %281 {approx = true} : vector<8x1xf32> -> vector<8x1xf32>
    %283 = vector.broadcast %282 : vector<8x1xf32> to vector<8x8xf32>
    %284 = arith.mulf %279, %283 : vector<8x8xf32>
    %285 = arith.truncf %284 : vector<8x8xf32> to vector<8x8xbf16>
    %286 = vector.extract_strided_slice %223 {offsets = [0, 16], sizes = [8, 8], strides = [1, 1]} : vector<8x32xf32> to vector<8x8xf32>
    %287 = arith.truncf %286 : vector<8x8xf32> to vector<8x8xbf16>
    %cst_111 = arith.constant dense<0.000000e+00> : vector<8x8xf32>
    %288 = tpu.matmul %285, %287, %cst_111 {dimension_numbers = #tpu.dot_dimension_numbers<[1], [0], [0], [1], [0, 0, 1, 1], [], []>} : vector<8x8xbf16>, vector<8x8xbf16>, vector<8x8xf32> -> vector<8x8xf32>
    %c0_112 = arith.constant 0 : index
    %c16_113 = arith.constant 16 : index
    %289 = vector.load %arg22[%c0_112, %c16_113] : memref<8x32xf32, #tpu.memory_space<vmem>>, vector<8x8xf32>
    tpu.vector_store %arg22[%c0_112, %c16_113], %288 {strides = array<i32>} : memref<8x32xf32, #tpu.memory_space<vmem>>, vector<8x8xf32>,
    %290 = vector.extract_strided_slice %221 {offsets = [0, 24], sizes = [8, 8], strides = [1, 1]} : vector<8x32xf32> to vector<8x8xf32>
    %291 = arith.truncf %290 : vector<8x8xf32> to vector<8x8xbf16>
    %292 = vector.extract_strided_slice %222 {offsets = [0, 24], sizes = [8, 8], strides = [1, 1]} : vector<8x32xf32> to vector<8x8xf32>
    %293 = arith.truncf %292 : vector<8x8xf32> to vector<8x8xbf16>
    %cst_114 = arith.constant dense<0.000000e+00> : vector<8x8xf32>
    %294 = tpu.matmul %291, %293, %cst_114 {dimension_numbers = #tpu.dot_dimension_numbers<[1], [1], [0], [0], [0, 0, 1, 0], [], []>} : vector<8x8xbf16>, vector<8x8xbf16>, vector<8x8xf32> -> vector<8x8xf32>
    %295 = vector.broadcast %25 : vector<1x8xf32> to vector<8x8xf32>
    %296 = arith.addf %294, %295 : vector<8x8xf32>
    %cst_115 = arith.constant dense<0xFF800000> : vector<8xf32>
    %297 = vector.multi_reduction <maximumf>, %296, %cst_115 [1] : vector<8x8xf32> to vector<8xf32>
    %298 = vector.shape_cast %297 : vector<8xf32> to vector<8x1xf32>
    %299 = vector.broadcast %298 : vector<8x1xf32> to vector<8x8xf32>
    %300 = arith.subf %296, %299 : vector<8x8xf32>
    %301 = math.exp %300 : vector<8x8xf32>
    %cst_116 = arith.constant dense<0.000000e+00> : vector<8xf32>
    %302 = vector.multi_reduction <add>, %301, %cst_116 [1] : vector<8x8xf32> to vector<8xf32>
    %303 = vector.shape_cast %302 : vector<8xf32> to vector<8x1xf32>
    %304 = tpu.reciprocal %303 {approx = true} : vector<8x1xf32> -> vector<8x1xf32>
    %305 = vector.broadcast %304 : vector<8x1xf32> to vector<8x8xf32>
    %306 = arith.mulf %301, %305 : vector<8x8xf32>
    %307 = arith.truncf %306 : vector<8x8xf32> to vector<8x8xbf16>
    %308 = vector.extract_strided_slice %223 {offsets = [0, 24], sizes = [8, 8], strides = [1, 1]} : vector<8x32xf32> to vector<8x8xf32>
    %309 = arith.truncf %308 : vector<8x8xf32> to vector<8x8xbf16>
    %cst_117 = arith.constant dense<0.000000e+00> : vector<8x8xf32>
    %310 = tpu.matmul %307, %309, %cst_117 {dimension_numbers = #tpu.dot_dimension_numbers<[1], [0], [0], [1], [0, 0, 1, 1], [], []>} : vector<8x8xbf16>, vector<8x8xbf16>, vector<8x8xf32> -> vector<8x8xf32>
    %c0_118 = arith.constant 0 : index
    %c24_119 = arith.constant 24 : index
    %311 = vector.load %arg22[%c0_118, %c24_119] : memref<8x32xf32, #tpu.memory_space<vmem>>, vector<8x8xf32>
    tpu.vector_store %arg22[%c0_118, %c24_119], %310 {strides = array<i32>} : memref<8x32xf32, #tpu.memory_space<vmem>>, vector<8x8xf32>,
    %c0_120 = arith.constant 0 : index
    %c0_121 = arith.constant 0 : index
    %312 = vector.load %arg22[%c0_120, %c0_121] : memref<8x32xf32, #tpu.memory_space<vmem>>, vector<8x32xf32>
    %c1_122 = arith.constant 1 : index
    %c0_123 = arith.constant 0 : index
    %c0_124 = arith.constant 0 : index
    %313 = vector.load %arg7[%c1_122, %c0_123, %c0_124] : memref<2x32x32xbf16, #tpu.memory_space<vmem>>, vector<1x32x32xbf16>
    %314 = vector.shape_cast %313 : vector<1x32x32xbf16> to vector<32x32xbf16>
    %315 = arith.truncf %312 : vector<8x32xf32> to vector<8x32xbf16>
    %cst_125 = arith.constant dense<0.000000e+00> : vector<8x32xf32>
    %316 = tpu.matmul %315, %314, %cst_125 {dimension_numbers = #tpu.dot_dimension_numbers<[1], [0], [0], [1], [0, 0, 1, 1], [], []>} : vector<8x32xbf16>, vector<32x32xbf16>, vector<8x32xf32> -> vector<8x32xf32>
    %c1_126 = arith.constant 1 : index
    %c0_127 = arith.constant 0 : index
    %c0_128 = arith.constant 0 : index
    %317 = vector.load %arg8[%c1_126, %c0_127, %c0_128] : memref<2x1x32xf32, #tpu.memory_space<vmem>>, vector<1x1x32xf32>
    %318 = vector.shape_cast %317 : vector<1x1x32xf32> to vector<1x32xf32>
    %319 = vector.broadcast %318 : vector<1x32xf32> to vector<8x32xf32>
    %320 = arith.addf %316, %319 : vector<8x32xf32>
    %321 = arith.addf %320, %212 : vector<8x32xf32>
    %c1_129 = arith.constant 1 : index
    %c0_130 = arith.constant 0 : index
    %c0_131 = arith.constant 0 : index
    %322 = vector.load %arg9[%c1_129, %c0_130, %c0_131] : memref<2x1x32xf32, #tpu.memory_space<vmem>>, vector<1x1x32xf32>
    %323 = vector.shape_cast %322 : vector<1x1x32xf32> to vector<1x32xf32>
    %c1_132 = arith.constant 1 : index
    %c0_133 = arith.constant 0 : index
    %c0_134 = arith.constant 0 : index
    %324 = vector.load %arg10[%c1_132, %c0_133, %c0_134] : memref<2x1x32xf32, #tpu.memory_space<vmem>>, vector<1x1x32xf32>
    %325 = vector.shape_cast %324 : vector<1x1x32xf32> to vector<1x32xf32>
    %cst_135 = arith.constant dense<0.000000e+00> : vector<8xf32>
    %326 = vector.multi_reduction <add>, %321, %cst_135 [1] : vector<8x32xf32> to vector<8xf32>
    %327 = vector.shape_cast %326 : vector<8xf32> to vector<8x1xf32>
    %cst_136 = arith.constant 3.200000e+01 : f32
    %328 = vector.broadcast %cst_136 : f32 to vector<8x1xf32>
    %329 = arith.divf %327, %328 : vector<8x1xf32>
    %330 = vector.broadcast %329 : vector<8x1xf32> to vector<8x32xf32>
    %331 = arith.subf %321, %330 : vector<8x32xf32>
    %332 = arith.mulf %331, %331 : vector<8x32xf32>
    %cst_137 = arith.constant dense<0.000000e+00> : vector<8xf32>
    %333 = vector.multi_reduction <add>, %332, %cst_137 [1] : vector<8x32xf32> to vector<8xf32>
    %334 = vector.shape_cast %333 : vector<8xf32> to vector<8x1xf32>
    %cst_138 = arith.constant 3.200000e+01 : f32
    %335 = vector.broadcast %cst_138 : f32 to vector<8x1xf32>
    %336 = arith.divf %334, %335 : vector<8x1xf32>
    %cst_139 = arith.constant 9.99999996E-13 : f32
    %337 = vector.broadcast %cst_139 : f32 to vector<8x1xf32>
    %338 = arith.addf %336, %337 : vector<8x1xf32>
    %339 = math.rsqrt %338 : vector<8x1xf32>
    %340 = vector.broadcast %339 : vector<8x1xf32> to vector<8x32xf32>
    %341 = arith.mulf %331, %340 : vector<8x32xf32>
    %342 = vector.broadcast %323 : vector<1x32xf32> to vector<8x32xf32>
    %343 = arith.mulf %341, %342 : vector<8x32xf32>
    %344 = vector.broadcast %325 : vector<1x32xf32> to vector<8x32xf32>
    %345 = arith.addf %343, %344 : vector<8x32xf32>
    %c1_140 = arith.constant 1 : index
    %c0_141 = arith.constant 0 : index
    %c0_142 = arith.constant 0 : index
    %346 = vector.load %arg11[%c1_140, %c0_141, %c0_142] : memref<2x32x64xbf16, #tpu.memory_space<vmem>>, vector<1x32x64xbf16>
    %347 = vector.shape_cast %346 : vector<1x32x64xbf16> to vector<32x64xbf16>
    %348 = arith.truncf %345 : vector<8x32xf32> to vector<8x32xbf16>
    %cst_143 = arith.constant dense<0.000000e+00> : vector<8x64xf32>
    %349 = tpu.matmul %348, %347, %cst_143 {dimension_numbers = #tpu.dot_dimension_numbers<[1], [0], [0], [1], [0, 0, 1, 1], [], []>} : vector<8x32xbf16>, vector<32x64xbf16>, vector<8x64xf32> -> vector<8x64xf32>
    %c1_144 = arith.constant 1 : index
    %c0_145 = arith.constant 0 : index
    %c0_146 = arith.constant 0 : index
    %350 = vector.load %arg12[%c1_144, %c0_145, %c0_146] : memref<2x1x64xf32, #tpu.memory_space<vmem>>, vector<1x1x64xf32>
    %351 = vector.shape_cast %350 : vector<1x1x64xf32> to vector<1x64xf32>
    %352 = vector.broadcast %351 : vector<1x64xf32> to vector<8x64xf32>
    %353 = arith.addf %349, %352 : vector<8x64xf32>
    %cst_147 = arith.constant 5.000000e-01 : f32
    %354 = vector.broadcast %cst_147 : f32 to vector<8x64xf32>
    %355 = arith.mulf %354, %353 : vector<8x64xf32>
    %cst_148 = arith.constant 4.471500e-02 : f32
    %356 = vector.broadcast %cst_148 : f32 to vector<8x64xf32>
    %357 = arith.mulf %356, %353 : vector<8x64xf32>
    %358 = arith.mulf %357, %353 : vector<8x64xf32>
    %359 = arith.mulf %358, %353 : vector<8x64xf32>
    %360 = arith.addf %353, %359 : vector<8x64xf32>
    %cst_149 = arith.constant 0.797884583 : f32
    %361 = vector.broadcast %cst_149 : f32 to vector<8x64xf32>
    %362 = arith.mulf %361, %360 : vector<8x64xf32>
    %363 = math.tanh %362 : vector<8x64xf32>
    %cst_150 = arith.constant 1.000000e+00 : f32
    %364 = vector.broadcast %cst_150 : f32 to vector<8x64xf32>
    %365 = arith.addf %364, %363 : vector<8x64xf32>
    %366 = arith.mulf %355, %365 : vector<8x64xf32>
    %c1_151 = arith.constant 1 : index
    %c0_152 = arith.constant 0 : index
    %c0_153 = arith.constant 0 : index
    %367 = vector.load %arg13[%c1_151, %c0_152, %c0_153] : memref<2x64x32xbf16, #tpu.memory_space<vmem>>, vector<1x64x32xbf16>
    %368 = vector.shape_cast %367 : vector<1x64x32xbf16> to vector<64x32xbf16>
    %369 = arith.truncf %366 : vector<8x64xf32> to vector<8x64xbf16>
    %cst_154 = arith.constant dense<0.000000e+00> : vector<8x32xf32>
    %370 = tpu.matmul %369, %368, %cst_154 {dimension_numbers = #tpu.dot_dimension_numbers<[1], [0], [0], [1], [0, 0, 1, 1], [], []>} : vector<8x64xbf16>, vector<64x32xbf16>, vector<8x32xf32> -> vector<8x32xf32>
    %c1_155 = arith.constant 1 : index
    %c0_156 = arith.constant 0 : index
    %c0_157 = arith.constant 0 : index
    %371 = vector.load %arg14[%c1_155, %c0_156, %c0_157] : memref<2x1x32xf32, #tpu.memory_space<vmem>>, vector<1x1x32xf32>
    %372 = vector.shape_cast %371 : vector<1x1x32xf32> to vector<1x32xf32>
    %373 = vector.broadcast %372 : vector<1x32xf32> to vector<8x32xf32>
    %374 = arith.addf %370, %373 : vector<8x32xf32>
    %375 = arith.addf %374, %345 : vector<8x32xf32>
    %c1_158 = arith.constant 1 : index
    %c0_159 = arith.constant 0 : index
    %c0_160 = arith.constant 0 : index
    %376 = vector.load %arg15[%c1_158, %c0_159, %c0_160] : memref<2x1x32xf32, #tpu.memory_space<vmem>>, vector<1x1x32xf32>
    %377 = vector.shape_cast %376 : vector<1x1x32xf32> to vector<1x32xf32>
    %c1_161 = arith.constant 1 : index
    %c0_162 = arith.constant 0 : index
    %c0_163 = arith.constant 0 : index
    %378 = vector.load %arg16[%c1_161, %c0_162, %c0_163] : memref<2x1x32xf32, #tpu.memory_space<vmem>>, vector<1x1x32xf32>
    %379 = vector.shape_cast %378 : vector<1x1x32xf32> to vector<1x32xf32>
    %cst_164 = arith.constant dense<0.000000e+00> : vector<8xf32>
    %380 = vector.multi_reduction <add>, %375, %cst_164 [1] : vector<8x32xf32> to vector<8xf32>
    %381 = vector.shape_cast %380 : vector<8xf32> to vector<8x1xf32>
    %cst_165 = arith.constant 3.200000e+01 : f32
    %382 = vector.broadcast %cst_165 : f32 to vector<8x1xf32>
    %383 = arith.divf %381, %382 : vector<8x1xf32>
    %384 = vector.broadcast %383 : vector<8x1xf32> to vector<8x32xf32>
    %385 = arith.subf %375, %384 : vector<8x32xf32>
    %386 = arith.mulf %385, %385 : vector<8x32xf32>
    %cst_166 = arith.constant dense<0.000000e+00> : vector<8xf32>
    %387 = vector.multi_reduction <add>, %386, %cst_166 [1] : vector<8x32xf32> to vector<8xf32>
    %388 = vector.shape_cast %387 : vector<8xf32> to vector<8x1xf32>
    %cst_167 = arith.constant 3.200000e+01 : f32
    %389 = vector.broadcast %cst_167 : f32 to vector<8x1xf32>
    %390 = arith.divf %388, %389 : vector<8x1xf32>
    %cst_168 = arith.constant 9.99999996E-13 : f32
    %391 = vector.broadcast %cst_168 : f32 to vector<8x1xf32>
    %392 = arith.addf %390, %391 : vector<8x1xf32>
    %393 = math.rsqrt %392 : vector<8x1xf32>
    %394 = vector.broadcast %393 : vector<8x1xf32> to vector<8x32xf32>
    %395 = arith.mulf %385, %394 : vector<8x32xf32>
    %396 = vector.broadcast %377 : vector<1x32xf32> to vector<8x32xf32>
    %397 = arith.mulf %395, %396 : vector<8x32xf32>
    %398 = vector.broadcast %379 : vector<1x32xf32> to vector<8x32xf32>
    %399 = arith.addf %397, %398 : vector<8x32xf32>
    %400 = vector.extract_strided_slice %399 {offsets = [0, 0], sizes = [1, 32], strides = [1, 1]} : vector<8x32xf32> to vector<1x32xf32>
    %c0_169 = arith.constant 0 : index
    %c0_170 = arith.constant 0 : index
    %401 = vector.load %arg17[%c0_169, %c0_170] : memref<32x32xbf16, #tpu.memory_space<vmem>>, vector<32x32xbf16>
    %402 = arith.truncf %400 : vector<1x32xf32> to vector<1x32xbf16>
    %cst_171 = arith.constant dense<0.000000e+00> : vector<1x32xf32>
    %403 = tpu.matmul %402, %401, %cst_171 {dimension_numbers = #tpu.dot_dimension_numbers<[1], [0], [0], [1], [0, 0, 1, 1], [], []>} : vector<1x32xbf16>, vector<32x32xbf16>, vector<1x32xf32> -> vector<1x32xf32>
    %c0_172 = arith.constant 0 : index
    %c0_173 = arith.constant 0 : index
    %404 = vector.load %arg18[%c0_172, %c0_173] : memref<1x32xf32, #tpu.memory_space<vmem>>, vector<1x32xf32>
    %405 = arith.addf %403, %404 : vector<1x32xf32>
    %406 = math.tanh %405 : vector<1x32xf32>
    %c0_174 = arith.constant 0 : index
    %c0_175 = arith.constant 0 : index
    %407 = vector.load %arg19[%c0_174, %c0_175] : memref<32x3xbf16, #tpu.memory_space<vmem>>, vector<32x3xbf16>
    %408 = arith.truncf %406 : vector<1x32xf32> to vector<1x32xbf16>
    %cst_176 = arith.constant dense<0.000000e+00> : vector<1x3xf32>
    %409 = tpu.matmul %408, %407, %cst_176 {dimension_numbers = #tpu.dot_dimension_numbers<[1], [0], [0], [1], [0, 0, 1, 1], [], []>} : vector<1x32xbf16>, vector<32x3xbf16>, vector<1x3xf32> -> vector<1x3xf32>
    %c0_177 = arith.constant 0 : index
    %c0_178 = arith.constant 0 : index
    %410 = vector.load %arg20[%c0_177, %c0_178] : memref<1x3xf32, #tpu.memory_space<vmem>>, vector<1x3xf32>
    %411 = arith.addf %409, %410 : vector<1x3xf32>
    %cst_179 = arith.constant dense<0xFF800000> : vector<1xf32>
    %412 = vector.multi_reduction <maximumf>, %411, %cst_179 [1] : vector<1x3xf32> to vector<1xf32>
    %413 = vector.shape_cast %412 : vector<1xf32> to vector<1x1xf32>
    %414 = vector.broadcast %413 : vector<1x1xf32> to vector<1x3xf32>
    %415 = arith.subf %411, %414 : vector<1x3xf32>
    %416 = math.exp %415 : vector<1x3xf32>
    %cst_180 = arith.constant dense<0.000000e+00> : vector<1xf32>
    %417 = vector.multi_reduction <add>, %416, %cst_180 [1] : vector<1x3xf32> to vector<1xf32>
    %418 = vector.shape_cast %417 : vector<1xf32> to vector<1x1xf32>
    %419 = vector.broadcast %418 : vector<1x1xf32> to vector<1x3xf32>
    %420 = arith.divf %416, %419 : vector<1x3xf32>
    %c0_181 = arith.constant 0 : index
    %c0_182 = arith.constant 0 : index
    %c0_183 = arith.constant 0 : index
    %421 = vector.load %arg21[%c0_181, %c0_182, %c0_183] : memref<1x1x3xf32, #tpu.memory_space<vmem>>, vector<1x1x3xf32>
    %422 = vector.shape_cast %421 : vector<1x1x3xf32> to vector<1x3xf32>
    %423 = vector.shape_cast %420 : vector<1x3xf32> to vector<1x1x3xf32>
    tpu.vector_store %arg21[%c0_181, %c0_182, %c0_183], %423 {strides = array<i32>} : memref<1x1x3xf32, #tpu.memory_space<vmem>>, vector<1x1x3xf32>,
    return
  }
  func.func @transform_0(%arg0: i32) -> (i32, i32, i32) {
    %c0_i32 = arith.constant 0 : i32
    %c0_i32_0 = arith.constant 0 : i32
    %c0_i32_1 = arith.constant 0 : i32
    return %arg0, %c0_i32, %c0_i32_0 : i32, i32, i32
  }
  func.func @transform_1(%arg0: i32) -> (i32, i32, i32) {
    %c0_i32 = arith.constant 0 : i32
    %c0_i32_0 = arith.constant 0 : i32
    %c0_i32_1 = arith.constant 0 : i32
    return %arg0, %c0_i32, %c0_i32_0 : i32, i32, i32
  }
  func.func @transform_2(%arg0: i32) -> (i32, i32) {
    %c0_i32 = arith.constant 0 : i32
    %c0_i32_0 = arith.constant 0 : i32
    %c0_i32_1 = arith.constant 0 : i32
    return %c0_i32, %c0_i32_0 : i32, i32
  }
  func.func @transform_3(%arg0: i32) -> (i32, i32) {
    %c0_i32 = arith.constant 0 : i32
    %c0_i32_0 = arith.constant 0 : i32
    %c0_i32_1 = arith.constant 0 : i32
    return %c0_i32, %c0_i32_0 : i32, i32
  }
  func.func @transform_4(%arg0: i32) -> (i32, i32, i32) {
    %c0_i32 = arith.constant 0 : i32
    %c0_i32_0 = arith.constant 0 : i32
    %c0_i32_1 = arith.constant 0 : i32
    %c0_i32_2 = arith.constant 0 : i32
    return %c0_i32, %c0_i32_0, %c0_i32_1 : i32, i32, i32
  }
  func.func @transform_5(%arg0: i32) -> (i32, i32, i32) {
    %c0_i32 = arith.constant 0 : i32
    %c0_i32_0 = arith.constant 0 : i32
    %c0_i32_1 = arith.constant 0 : i32
    %c0_i32_2 = arith.constant 0 : i32
    return %c0_i32, %c0_i32_0, %c0_i32_1 : i32, i32, i32
  }
  func.func @transform_6(%arg0: i32) -> (i32, i32, i32) {
    %c0_i32 = arith.constant 0 : i32
    %c0_i32_0 = arith.constant 0 : i32
    %c0_i32_1 = arith.constant 0 : i32
    %c0_i32_2 = arith.constant 0 : i32
    return %c0_i32, %c0_i32_0, %c0_i32_1 : i32, i32, i32
  }
  func.func @transform_7(%arg0: i32) -> (i32, i32, i32) {
    %c0_i32 = arith.constant 0 : i32
    %c0_i32_0 = arith.constant 0 : i32
    %c0_i32_1 = arith.constant 0 : i32
    %c0_i32_2 = arith.constant 0 : i32
    return %c0_i32, %c0_i32_0, %c0_i32_1 : i32, i32, i32
  }
  func.func @transform_8(%arg0: i32) -> (i32, i32, i32) {
    %c0_i32 = arith.constant 0 : i32
    %c0_i32_0 = arith.constant 0 : i32
    %c0_i32_1 = arith.constant 0 : i32
    %c0_i32_2 = arith.constant 0 : i32
    return %c0_i32, %c0_i32_0, %c0_i32_1 : i32, i32, i32
  }
  func.func @transform_9(%arg0: i32) -> (i32, i32, i32) {
    %c0_i32 = arith.constant 0 : i32
    %c0_i32_0 = arith.constant 0 : i32
    %c0_i32_1 = arith.constant 0 : i32
    %c0_i32_2 = arith.constant 0 : i32
    return %c0_i32, %c0_i32_0, %c0_i32_1 : i32, i32, i32
  }
  func.func @transform_10(%arg0: i32) -> (i32, i32, i32) {
    %c0_i32 = arith.constant 0 : i32
    %c0_i32_0 = arith.constant 0 : i32
    %c0_i32_1 = arith.constant 0 : i32
    %c0_i32_2 = arith.constant 0 : i32
    return %c0_i32, %c0_i32_0, %c0_i32_1 : i32, i32, i32
  }
  func.func @transform_11(%arg0: i32) -> (i32, i32, i32) {
    %c0_i32 = arith.constant 0 : i32
    %c0_i32_0 = arith.constant 0 : i32
    %c0_i32_1 = arith.constant 0 : i32
    %c0_i32_2 = arith.constant 0 : i32
    return %c0_i32, %c0_i32_0, %c0_i32_1 : i32, i32, i32
  }
  func.func @transform_12(%arg0: i32) -> (i32, i32, i32) {
    %c0_i32 = arith.constant 0 : i32
    %c0_i32_0 = arith.constant 0 : i32
    %c0_i32_1 = arith.constant 0 : i32
    %c0_i32_2 = arith.constant 0 : i32
    return %c0_i32, %c0_i32_0, %c0_i32_1 : i32, i32, i32
  }
  func.func @transform_13(%arg0: i32) -> (i32, i32, i32) {
    %c0_i32 = arith.constant 0 : i32
    %c0_i32_0 = arith.constant 0 : i32
    %c0_i32_1 = arith.constant 0 : i32
    %c0_i32_2 = arith.constant 0 : i32
    return %c0_i32, %c0_i32_0, %c0_i32_1 : i32, i32, i32
  }
  func.func @transform_14(%arg0: i32) -> (i32, i32, i32) {
    %c0_i32 = arith.constant 0 : i32
    %c0_i32_0 = arith.constant 0 : i32
    %c0_i32_1 = arith.constant 0 : i32
    %c0_i32_2 = arith.constant 0 : i32
    return %c0_i32, %c0_i32_0, %c0_i32_1 : i32, i32, i32
  }
  func.func @transform_15(%arg0: i32) -> (i32, i32, i32) {
    %c0_i32 = arith.constant 0 : i32
    %c0_i32_0 = arith.constant 0 : i32
    %c0_i32_1 = arith.constant 0 : i32
    %c0_i32_2 = arith.constant 0 : i32
    return %c0_i32, %c0_i32_0, %c0_i32_1 : i32, i32, i32
  }
  func.func @transform_16(%arg0: i32) -> (i32, i32) {
    %c0_i32 = arith.constant 0 : i32
    %c0_i32_0 = arith.constant 0 : i32
    %c0_i32_1 = arith.constant 0 : i32
    return %c0_i32, %c0_i32_0 : i32, i32
  }
  func.func @transform_17(%arg0: i32) -> (i32, i32) {
    %c0_i32 = arith.constant 0 : i32
    %c0_i32_0 = arith.constant 0 : i32
    %c0_i32_1 = arith.constant 0 : i32
    return %c0_i32, %c0_i32_0 : i32, i32
  }
  func.func @transform_18(%arg0: i32) -> (i32, i32) {
    %c0_i32 = arith.constant 0 : i32
    %c0_i32_0 = arith.constant 0 : i32
    %c0_i32_1 = arith.constant 0 : i32
    return %c0_i32, %c0_i32_0 : i32, i32
  }
  func.func @transform_19(%arg0: i32) -> (i32, i32) {
    %c0_i32 = arith.constant 0 : i32
    %c0_i32_0 = arith.constant 0 : i32
    %c0_i32_1 = arith.constant 0 : i32
    return %c0_i32, %c0_i32_0 : i32, i32
  }
  func.func @transform_20(%arg0: i32) -> (i32, i32, i32) {
    %c0_i32 = arith.constant 0 : i32
    %c0_i32_0 = arith.constant 0 : i32
    %c0_i32_1 = arith.constant 0 : i32
    return %arg0, %c0_i32, %c0_i32_0 : i32, i32, i32
  }
}

</mosaic_0001>

<bundles_post_ra>
// kernel: mybert_forward.1
= control target key start
LH: loop header
LB: loop body
LE: loop exit
PB: predicated region body
PF: predicated region fallthrough
CT: control target
= control target key end

     0   :  { %s3687_s0 = inlined_call_operand.vmem [shape: f32[2,8,32], index: 0, kind: input, shape index: {}]   ;;  %s3688_s1 = inlined_call_operand.vmem [shape: f32[2,1,8], index: 1, kind: input, shape index: {}]   ;;  %s3689_s2 = inlined_call_operand.vmem [shape: f32[1,32], index: 2, kind: input, shape index: {}]   ;;  %s3690_s3 = inlined_call_operand.vmem [shape: f32[1,32], index: 3, kind: input, shape index: {}]   ;;  %s3691_s4 = inlined_call_operand.vmem [shape: bf16[2,32,96], index: 4, kind: input, shape index: {}]   ;;  %s3692_s5 = inlined_call_operand.vmem [shape: f32[2,1,96], index: 5, kind: input, shape index: {}]   ;;  %s3693_s6 = inlined_call_operand.vmem [shape: bf16[2,32,32], index: 6, kind: input, shape index: {}]   ;;  %s3694_s7 = inlined_call_operand.vmem [shape: f32[2,1,32], index: 7, kind: input, shape index: {}]   ;;  %s3695_s8 = inlined_call_operand.vmem [shape: f32[2,1,32], index: 8, kind: input, shape index: {}]   ;;  %s3696_s9 = inlined_call_operand.vmem [shape: f32[2,1,32], index: 9, kind: input, shape index: {}]   ;;  %s3697_s10 = inlined_call_operand.vmem [shape: bf16[2,32,64], index: 10, kind: input, shape index: {}]   ;;  %s3698_s11 = inlined_call_operand.vmem [shape: f32[2,1,64], index: 11, kind: input, shape index: {}]   ;;  %s3699_s12 = inlined_call_operand.vmem [shape: bf16[2,64,32], index: 12, kind: input, shape index: {}]   ;;  %s3700_s13 = inlined_call_operand.vmem [shape: f32[2,1,32], index: 13, kind: input, shape index: {}]   ;;  %s3701_s14 = inlined_call_operand.vmem [shape: f32[2,1,32], index: 14, kind: input, shape index: {}]   ;;  %s3702_s15 = inlined_call_operand.vmem [shape: f32[2,1,32], index: 15, kind: input, shape index: {}]   ;;  %s3703_s16 = inlined_call_operand.vmem [shape: bf16[32,32], index: 16, kind: input, shape index: {}]   ;;  %s3704_s17 = inlined_call_operand.vmem [shape: f32[1,32], index: 17, kind: input, shape index: {}]   ;;  %s3705_s18 = inlined_call_operand.vmem [shape: bf16[32,3], index: 18, kind: input, shape index: {}]   ;;  %s3706_s19 = inlined_call_operand.vmem [shape: f32[1,3], index: 19, kind: input, shape index: {}]   ;;  %s3707_s20 = inlined_call_operand.hbm [shape: f32[2,1,3], index: 20, kind: output, shape index: {}]  }
   0x1   :  { %3727 = sst [smem:[#allocation10_spill]] %s3687_s0 }
   0x2   :  { %3728 = sst [smem:[#allocation11_spill]] %s3688_s1 }
   0x3   :  { %3729 = sst [smem:[#allocation12_spill]] %s3689_s2 }
   0x4   :  { %3730 = sst [smem:[#allocation13_spill]] %s3690_s3 }
   0x5   :  { %3731 = sst [smem:[#allocation14_spill]] %s3691_s4 }
   0x6   :  { %3732 = sst [smem:[#allocation15_spill]] %s3692_s5 }
   0x7   :  { %25 = vsyncpa [#allocation4], 0 }
   0x8   :  { %27 = vsyncpa [#allocation4 + $0x1], 0  ;;  %s3201_s1 = smov 0   ;;  %s3203_s22 = smov 0  }
   0x9   :  { %s3205_s23 = smov 0   ;;  %s3207_s24 = smov 0  }
   0xa LB: > { %3733 = sst [smem:[#allocation6_spill]] %s3073_s23  ;;  %s3222_s2 = sadd.s32 4294967295, %s3077_s24   ;;  %s3077_s24 = sphi %s3207_s24, %s3759_s24   ;;  %s3073_s23 = sphi %s3205_s23, %s3761_s23   ;;  %s3069_s22 = sphi %s3203_s22, %s3763_s22   ;;  %s3065_s1 = sphi %s3201_s1, %s3762_s1  }
   0xb   : > { %s2529_s25 = sadd.s32 4294967294, %s3077_s24   ;;  %s3226_s3 = sadd.s32 1, %s3077_s24  }
   0xc   : > { %3734 = sst [smem:[#allocation7_spill]] %s3226_s3  ;;  %s470_s26 = sadd.s32 1, %s3073_s23 }
   0xd   : > { %s467_s27 = ssub.s32 %s3077_s24, %s3226_s3  ;;  %p480_p0 = scmp.ne.s32.totalorder %s3073_s23, %s3069_s22 }
   0xe   : > { %p468_p1 = scmp.eq.s32.totalorder %s467_s27, 0  ;;  %p481_p2 = scmp.eq.s32.totalorder %s3222_s2, 1 }
   0xf   : > { %p486_p3 = scmp.ne.s32.totalorder %s3069_s22, %s3065_s1  ;;  %p487_p4 = scmp.eq.s32.totalorder %s2529_s25, 1 }
  0x10   : > { %s3237_s28 = scalar_select %p468_p1, %s3073_s23, %s470_s26  }
  0x11   : > { %p3239_p5 = por %p481_p2, %p480_p0  ;;  %p3243_p6 = por %p487_p4, %p486_p3 }
  0x12   : > { %3735 = sst [smem:[#allocation8_spill]] %s3237_s28  ;;  %p2532_p7 = scmp.ge.s32.totalorder %s3077_s24, 1 }
  0x13   : > { %s3737_s29 = scalar_select %p3243_p6, 1, 0 }
  0x14   : > { %p572_p8 = scmp.lt.s32.totalorder %s3077_s24, 3 }
  0x15   : > { %3738 = sst [smem:[#allocation9_spill]] %s3737_s29 }
  0x16   : > { %p573_p9 = pnand %p2532_p7, %p572_p8 }
  0x17   : > { %p631_p10 = scmp.lt.s32.totalorder (!%p573_p9), %s3222_s2, 1  ;;  %vm642_vm0 = vcmask (!%p573_p9), 261120   ;;  %s3739_s26 = sld [smem:[#allocation10_spill]] (!%p573_p9)  ;;  %v3079_v8 = vmov (!%p573_p9), 0.0   ;;  %vm3080_vm1 = vmmov (!%p573_p9), 0   ;;  %vm749_vm2 = vcmask (!%p573_p9), 64512  }
  0x18   : > { %576 = sbr.rel (%p573_p9) target bundleno = 6260 (0x1874), region = 100  ;;  %s3740_s3 = sld [smem:[#allocation14_spill]] (!%p573_p9)  ;;  %2700 = vmatprep.subr.bf16.mxu0 (!%p573_p9), %v3079_v8  ;;  %2708 = vmatprep.subr.bf16.mxu1 (!%p573_p9), %v3079_v8  ;;  %vm813_vm3 = vcmask (!%p573_p9), 1043456   ;;  %vm972_vm4 = vcmask (!%p573_p9), 130112   ;;  %vm1088_vm5 = vcmask (!%p573_p9), 195712   ;;  %vm1204_vm6 = vcmask (!%p573_p9), 261312  }
  0x19   : > { %2704 = vmatprep.mubr.msk.bf16.mxu0 (!%p573_p9), %vm3080_vm1, %v3079_v8  ;;  %2710 = vmatprep.mubr.msk.bf16.mxu1 (!%p573_p9), %vm3080_vm1, %v3079_v8  ;;  %s3741_s25 = sld [smem:[#allocation12_spill]] (!%p573_p9)  ;;  %s3743_s5 = sld [smem:[#allocation15_spill]] (!%p573_p9)  ;;  %vm1420_vm7 = vcmask (!%p573_p9), 523264   ;;  %vm2439_vm8 = vcmask (!%p573_p9), 16384  }
  0x1a   : > { %s3724_s23 = smov (!%p573_p9), 120   ;;  %s3725_s28 = smov (!%p573_p9), 96  }
  0x1b   : > { %s3720_s29 = smov (!%p573_p9), 80   ;;  %s3723_s21 = smov (!%p573_p9), 8  }
  0x1e   : > { %v2939_v7 = vld [vmem:[%s3740_s3] sm:$0xff] (!%p573_p9)   ;;  %v2940_v9 = vld [vmem:[%s3740_s3 + $0x8] sm:$0xff] (!%p573_p9)  }
  0x1f   : > { %s3251_s30 = scalar_select %p631_p10, %s3222_s2, 1  ;;  %2701 = vmatpush3.bf16.msra.mxu0 %v2939_v7  ;;  %v2534_v14 = vld [vmem:[%s3741_s25] ss:$0 sm:$0xff] }
  0x20   : > { %2702 = vmatprep.subr.bf16.mxu0 %v3079_v8  ;;  %v2536_v20 = vld [vmem:[%s3743_s5] ss:$0 sm:$0xff]  ;;  %s3083_s25 = smov 88  }
  0x21   : > { %s2533_s0 = sshll.u32 %s3251_s30, 3 }
  0x22   : > { %s634_s27 = scalar_lea.vmem %s3739_s26, %s2533_s0  ;;  %s3742_s0 = sld [smem:[#allocation13_spill]] }
  0x23   : > { %v639_v0 = vld [vmem:[%s634_s27] sm:$0xff]  ;;  %2703 = vmatpush3.bf16.msra.mxu0 %v2940_v9  ;;  %s3715_s26 = smov 112   ;;  %s3714_s27 = smov 72  }
  0x24   : > { %v643_v1 = vsel %vm642_vm0, %v639_v0, 0.0  ;;  %2714 = vmatprep.subr.bf16.mxu0 %v3079_v8 }
  0x25   : > { %644 = vadd.xlane.f32.xlu0 %v643_v1 }
  0x28   : > { %v2535_v16 = vld [vmem:[%s3742_s0] ss:$0 sm:$0xff]  ;;  %s3713_s0 = smov 104  }
  0xb2   : > { %v645_v2 = vpop.xlane.xlu0 %644 }
  0xb3   : > { %v647_v3 = vmul.f32 0.03125, %v645_v2 }
  0xb5   : > { %v648_v4 = vsub.f32 %v639_v0, %v647_v3 }
  0xb7   : > { %v649_v5 = vmul.f32 %v648_v4, %v648_v4 }
  0xb9   : > { %v650_v6 = vsel %vm642_vm0, %v649_v5, 0.0 }
  0xba   : > { %651 = vadd.xlane.f32.xlu0 %v650_v6 }
 0x147   : > { %v652_v10 = vpop.xlane.xlu0 %651 }
 0x148   : > { %v653_v11 = vmul.f32 0.03125, %v652_v10 }
 0x14a   : > { %v654_v12 = vadd.f32 1e-12, %v653_v11 }
 0x14c   : > { %2963 = vrsqrt.f32 %v654_v12 }
 0x156   : > { %v2964_v13 = vpop.eup %2963 }
 0x157   : > { %v656_v15 = vmul.f32 %v2964_v13, %v648_v4 }
 0x159   : > { %v663_v17 = vmul.f32 %v2534_v14, %v656_v15 }
 0x15b   : > { %v3279_v18 = vadd.f32 %v2535_v16, %v663_v17 }
 0x15d   : > { %v676_v19 = vpack.c.bf16 %v3279_v18, %v3279_v18 }
 0x15f   : > { %2705 = vmatmul.mubr.msk.bf16.vlgmr.msra.gmra.mrb[0].mxu0 %vm642_vm0, %v676_v19 }
 0x160   : > { %2716 = vmatprep.mubr.msk.bf16.mxu0 %vm3080_vm1, %v3079_v8 }
 0x232   : > { %v733_v21 = vpop.f32.mrb[0].mxu0 }
 0x233   : > { %v734_v22 = vadd.f32 %v2536_v20, %v733_v21  ;;  %v2706_v23 = vpop.f32.mrb[1].mxu0 }
 0x234   : > { %v736_v24 = vpop.f32.mrb[2].mxu0 }
 0x235   : > { %v3289_v25 = vpack.c.bf16 %v734_v22, %v734_v22  ;;  %v2707_v26 = vpop.f32.mrb[3].mxu0 }
 0x237   : > { %858 = vrot.lane.b32.xlu0 %v3289_v25, %s3724_s23  ;;  %747 = vrot.lane.b32.xlu1 %v3289_v25, %s3725_s28  ;;  %s3749_s23 = smov 72   ;;  %s3750_s28 = smov 104  }
 0x23b   : > { %860 = vrot.lane.b32.xlu1 %v3289_v25, %s3083_s25 }
 0x23f   : > { %976 = vrot.lane.b32.xlu1 %v3289_v25, %s3720_s29  ;;  %s3722_s29 = smov 16  }
 0x243   : > { %974 = vrot.lane.b32.xlu1 %v3289_v25, %s3715_s26 }
 0x247   : > { %1092 = vrot.lane.b32.xlu1 %v3289_v25, %s3714_s27  ;;  %s3744_s27 = sld [smem:[#allocation11_spill]] }
 0x24b   : > { %1090 = vrot.lane.b32.xlu1 %v3289_v25, %s3713_s0  ;;  %s3716_s0 = smov 40  }
 0x24d   : > { %s637_s26 = scalar_lea.vmem %s3744_s27, %s3251_s30  ;;  %s3719_s30 = smov 64  }
 0x24e   : > { %v3330_v38 = vld [vmem:[%s637_s26] ss:$0 sm:$0xff]  ;;  %s3718_s26 = smov 56   ;;  %s3717_s27 = smov 48  }
 0x2a9   : > { %v748_v27 = vpop.permute.xlu1 %747  ;;  %v859_v32 = vpop.permute.xlu0 %858 }
 0x2aa   : > { %v754_v28 = vsel %vm749_vm2, %v748_v27, 0 }
 0x2ab   : > { %2709 = vmatpush3.bf16.xpose.msra.mxu1 %v754_v28 }
 0x2ac   : > { %2720 = vmatprep.subr.bf16.mxu1 %v3079_v8 }
 0x2ad   : > { %v861_v29 = vpop.permute.xlu1 %860 }
 0x2ae   : > { %v866_v30 = vsel %vm749_vm2, %v861_v29, 0 }
 0x2b1   : > { %v977_v31 = vpop.permute.xlu1 %976 }
 0x2b2   : > { %2711 = vmatmul.mubr.msk.bf16.vlgmr.msra.gmra.mrb[0].mxu1 %vm749_vm2, %v3289_v25  ;;  %v982_v34 = vsel %vm749_vm2, %v977_v31, 0 }
 0x2b3   : > { %2721 = vmatpush3.bf16.xpose.msra.mxu1 %v866_v30  ;;  %2722 = vmatprep.mubr.msk.bf16.mxu1 %vm3080_vm1, %v3079_v8 }
 0x2b4   : > { %2732 = vmatprep.subr.bf16.mxu1 %v3079_v8 }
 0x2b5   : > { %v975_v33 = vpop.permute.xlu1 %974 }
 0x2b9   : > { %v1093_v35 = vpop.permute.xlu1 %1092 }
 0x2ba   : > { %2723 = vmatmul.mubr.msk.bf16.vlgmr.msra.gmra.mrb[4].mxu1 %vm749_vm2, %v859_v32  ;;  %v1098_v36 = vsel %vm749_vm2, %v1093_v35, 0 }
 0x2bb   : > { %2733 = vmatpush3.bf16.xpose.msra.mxu1 %v982_v34  ;;  %2734 = vmatprep.mubr.msk.bf16.mxu1 %vm3080_vm1, %v3079_v8 }
 0x2bc   : > { %2744 = vmatprep.subr.bf16.mxu1 %v3079_v8 }
 0x2bd   : > { %v1091_v37 = vpop.permute.xlu1 %1090 }
 0x2c2   : > { %2735 = vmatmul.mubr.msk.bf16.vlgmr.msra.gmra.mrb[8].mxu1 %vm749_vm2, %v975_v33 }
 0x2c3   : > { %2745 = vmatpush3.bf16.xpose.msra.mxu1 %v1098_v36  ;;  %2746 = vmatprep.mubr.msk.bf16.mxu1 %vm3080_vm1, %v3079_v8 }
 0x2c4   : > { %2756 = vmatprep.subr.bf16.mxu1 %v3079_v8 }
 0x2ca   : > { %2747 = vmatmul.mubr.msk.bf16.vlgmr.msra.gmra.mrb[12].mxu1 %vm749_vm2, %v1091_v37 }
 0x2cb   : > { %2760 = vmatprep.mubr.msk.bf16.mxu1 %vm3080_vm1, %v3079_v8 }
 0x385   : > { %v790_v39 = vpop.f32.mrb[0].mxu1 }
 0x386   : > { %v791_v40 = vadd.f32 %v3330_v38, %v790_v39  ;;  %v2712_v41 = vpop.f32.mrb[1].mxu1 }
 0x387   : > { %v793_v42 = vpop.f32.mrb[2].mxu1 }
 0x388   : > { %v2713_v43 = vpop.f32.mrb[3].mxu1  ;;  %v796_v44 = vsel %vm749_vm2, %v791_v40, -inf }
 0x389   : > { %797 = vmax.xlane.f32.xlu1 %v796_v44 }
 0x38d   : > { %v902_v45 = vpop.f32.mrb[4].mxu1 }
 0x38e   : > { %v903_v46 = vadd.f32 %v3330_v38, %v902_v45  ;;  %v2724_v47 = vpop.f32.mrb[5].mxu1 }
 0x38f   : > { %v905_v48 = vpop.f32.mrb[6].mxu1 }
 0x390   : > { %v2725_v49 = vpop.f32.mrb[7].mxu1  ;;  %v908_v50 = vsel %vm749_vm2, %v903_v46, -inf }
 0x391   : > { %909 = vmax.xlane.f32.xlu0 %v908_v50 }
 0x395   : > { %v1018_v51 = vpop.f32.mrb[8].mxu1 }
 0x396   : > { %v1019_v52 = vadd.f32 %v3330_v38, %v1018_v51  ;;  %v2736_v53 = vpop.f32.mrb[9].mxu1 }
 0x397   : > { %v1021_v54 = vpop.f32.mrb[10].mxu1 }
 0x398   : > { %v2737_v55 = vpop.f32.mrb[11].mxu1  ;;  %v1024_v56 = vsel %vm749_vm2, %v1019_v52, -inf  ;;  %v2941_v54 = vld [vmem:[%s3693_s6] sm:$0xff]  }
 0x399   : > { %1025 = vmax.xlane.f32.xlu1 %v1024_v56  ;;  %2757 = vmatpush3.bf16.msra.mxu1 %v2941_v54  ;;  %v2942_v55 = vld [vmem:[%s3693_s6 + $0x8] sm:$0xff]  }
 0x39a   : > { %2758 = vmatprep.subr.bf16.mxu1 %v3079_v8 }
 0x39d   : > { %v1134_v57 = vpop.f32.mrb[12].mxu1  ;;  %2759 = vmatpush3.bf16.msra.mxu1 %v2942_v55 }
 0x39e   : > { %v1135_v58 = vadd.f32 %v3330_v38, %v1134_v57  ;;  %v2748_v59 = vpop.f32.mrb[13].mxu1  ;;  %2772 = vmatprep.subr.bf16.mxu1 %v3079_v8 }
 0x39f   : > { %v1137_v60 = vpop.f32.mrb[14].mxu1 }
 0x3a0   : > { %v2749_v61 = vpop.f32.mrb[15].mxu1  ;;  %v1140_v62 = vsel %vm749_vm2, %v1135_v58, -inf }
 0x3a1   : > { %1141 = vmax.xlane.f32.xlu0 %v1140_v62 }
 0x416   : > { %v798_v63 = vpop.xlane.xlu1 %797 }
 0x417   : > { %v799_v0 = vsub.f32 %v791_v40, %v798_v63 }
 0x419   : > { %v800_v1 = vmul.f32 1.442695, %v799_v0 }
 0x41b   : > { %2965 = vpow2.f32 %v800_v1 }
 0x41e   : > { %v910_v2 = vpop.xlane.xlu0 %909 }
 0x41f   : > { %v911_v3 = vsub.f32 %v903_v46, %v910_v2 }
 0x421   : > { %v912_v4 = vmul.f32 1.442695, %v911_v3 }
 0x423   : > { %2967 = vpow2.f32 %v912_v4 }
 0x425   : > { %v2966_v5 = vpop.eup %2965 }
 0x426   : > { %v802_v6 = vsel %vm749_vm2, %v2966_v5, 0.0  ;;  %v1026_v15 = vpop.xlane.xlu1 %1025 }
 0x427   : > { %803 = vadd.xlane.f32.xlu1 %v802_v6  ;;  %v1027_v16 = vsub.f32 %v1019_v52, %v1026_v15 }
 0x429   : > { %v1028_v17 = vmul.f32 1.442695, %v1027_v16 }
 0x42d   : > { %v2968_v7 = vpop.eup %2967 }
 0x42e   : > { %v1142_v9 = vpop.xlane.xlu0 %1141  ;;  %v914_v10 = vsel %vm749_vm2, %v2968_v7, 0.0 }
 0x42f   : > { %v1143_v11 = vsub.f32 %v1135_v58, %v1142_v9  ;;  %915 = vadd.xlane.f32.xlu0 %v914_v10 }
 0x431   : > { %v1144_v12 = vmul.f32 1.442695, %v1143_v11 }
 0x433   : > { %2969 = vpow2.f32 %v1144_v12 }
 0x434   : > { %2971 = vpow2.f32 %v1028_v17 }
 0x438   : > { %808 = vrot.lane.b32.xlu1 %v3289_v25, %s3719_s30  ;;  %s3746_s30 = smov 120  }
 0x43d   : > { %v2970_v13 = vpop.eup %2969 }
 0x43e   : > { %v1146_v14 = vsel %vm749_vm2, %v2970_v13, 0.0  ;;  %v2972_v19 = vpop.eup %2971 }
 0x43f   : > { %1147 = vadd.xlane.f32.xlu0 %v1146_v14  ;;  %v1030_v20 = vsel %vm749_vm2, %v2972_v19, 0.0 }
 0x455   : > { %920 = vrot.lane.b32.xlu0 %v3289_v25, %s3718_s26  ;;  %s3748_s26 = smov 112  }
 0x45c   : > { %1031 = vadd.xlane.f32.xlu1 %v1030_v20  ;;  %v2943_v20 = vld [vmem:[%s3697_s10] sm:$0xff]  }
 0x46d   : > { %1036 = vrot.lane.b32.xlu1 %v3289_v25, %s3717_s27  ;;  %s3721_s27 = smov 24  }
 0x471   : > { %1152 = vrot.lane.b32.xlu1 %v3289_v25, %s3716_s0  ;;  %s3745_s0 = smov 96  }
 0x4b4   : > { %v804_v21 = vpop.xlane.xlu1 %803 }
 0x4b5   : > { %2973 = vrcp.f32 %v804_v21  ;;  %v2944_v21 = vld [vmem:[%s3697_s10 + $0x8] sm:$0xff]  }
 0x4b8   : > { %v809_v22 = vpop.permute.xlu1 %808 }
 0x4b9   : > { %v815_v23 = vsel %vm813_vm3, %v809_v22, 0 }
 0x4ba   : > { %2715 = vmatpush3.bf16.msra.mxu0 %v815_v23 }
 0x4bb   : > { %2726 = vmatprep.subr.bf16.mxu0 %v3079_v8 }
 0x4bc   : > { %v916_v26 = vpop.xlane.xlu0 %915 }
 0x4bd   : > { %2975 = vrcp.f32 %v916_v26  ;;  %v2553_v26 = vld [vmem:[%s3695_s8] ss:$0 sm:$0xff] }
 0x4bf   : > { %v2974_v24 = vpop.eup %2973 }
 0x4c0   : > { %v806_v27 = vmul.f32 %v2974_v24, %v2966_v5  ;;  %v2549_v5 = vld [vmem:[%s3694_s7] ss:$0 sm:$0xff] }
 0x4c2   : > { %v807_v28 = vpack.c.bf16 %v806_v27, %v806_v27 }
 0x4c4   : > { %2717 = vmatmul.mubr.msk.bf16.vlgmr.msra.gmra.mrb[4].mxu0 %vm749_vm2, %v807_v28  ;;  %v2554_v28 = vld [vmem:[%s3696_s9] ss:$0 sm:$0xff] }
 0x4c5   : > { %2728 = vmatprep.mubr.msk.bf16.mxu0 %vm3080_vm1, %v3079_v8 }
 0x4c7   : > { %v2976_v25 = vpop.eup %2975 }
 0x4c8   : > { %v918_v30 = vmul.f32 %v2976_v25, %v2968_v7 }
 0x4ca   : > { %v919_v33 = vpack.c.bf16 %v918_v30, %v918_v30 }
 0x4cc   : > { %v1148_v29 = vpop.xlane.xlu0 %1147 }
 0x4d0   : > { %v921_v31 = vpop.permute.xlu0 %920 }
 0x4d1   : > { %v926_v32 = vsel %vm813_vm3, %v921_v31, 0  ;;  %v2945_v31 = vld [vmem:[%s3699_s12] sm:$0xff]  }
 0x4d2   : > { %2727 = vmatpush3.bf16.msra.mxu0 %v926_v32  ;;  %v2946_v32 = vld [vmem:[%s3699_s12 + $0x8] sm:$0xff]  }
 0x4d3   : > { %2738 = vmatprep.subr.bf16.mxu0 %v3079_v8 }
 0x4d5   : > { %2729 = vmatmul.mubr.msk.bf16.vlgmr.msra.gmra.mrb[8].mxu0 %vm749_vm2, %v919_v33  ;;  %v2947_v33 = vld [vmem:[%s3699_s12 + $0x10] sm:$0xff]  }
 0x4d6   : > { %2740 = vmatprep.mubr.msk.bf16.mxu0 %vm3080_vm1, %v3079_v8 }
 0x4e9   : > { %v1032_v34 = vpop.xlane.xlu1 %1031 }
 0x4ea   : > { %2977 = vrcp.f32 %v1032_v34  ;;  %v2948_v34 = vld [vmem:[%s3699_s12 + $0x18] sm:$0xff]  }
 0x4eb   : > { %2979 = vrcp.f32 %v1148_v29 }
 0x4ed   : > { %v1037_v35 = vpop.permute.xlu1 %1036 }
 0x4ee   : > { %v1042_v36 = vsel %vm813_vm3, %v1037_v35, 0  ;;  %v2555_v35 = vld [vmem:[%s3698_s11] ss:$0 sm:$0xff] }
 0x4ef   : > { %2739 = vmatpush3.bf16.msra.mxu0 %v1042_v36 }
 0x4f0   : > { %2750 = vmatprep.subr.bf16.mxu0 %v3079_v8 }
 0x4f1   : > { %v1153_v40 = vpop.permute.xlu1 %1152 }
 0x4f2   : > { %v1158_v43 = vsel %vm813_vm3, %v1153_v40, 0 }
 0x4f4   : > { %v2978_v37 = vpop.eup %2977 }
 0x4f5   : > { %v1034_v39 = vmul.f32 %v2978_v37, %v2972_v19  ;;  %v2980_v42 = vpop.eup %2979 }
 0x4f6   : > { %v1150_v44 = vmul.f32 %v2980_v42, %v2970_v13 }
 0x4f7   : > { %v1035_v41 = vpack.c.bf16 %v1034_v39, %v1034_v39 }
 0x4f8   : > { %v1151_v45 = vpack.c.bf16 %v1150_v44, %v1150_v44 }
 0x4f9   : > { %2741 = vmatmul.mubr.msk.bf16.vlgmr.msra.gmra.mrb[12].mxu0 %vm749_vm2, %v1035_v41 }
 0x4fa   : > { %2751 = vmatpush3.bf16.msra.mxu0 %v1158_v43  ;;  %2752 = vmatprep.mubr.msk.bf16.mxu0 %vm3080_vm1, %v3079_v8 }
 0x4fb   : > { %2764 = vmatprep.subr.bf16.mxu0 %v3079_v8 }
 0x501   : > { %2753 = vmatmul.mubr.msk.bf16.vlgmr.msra.gmra.mrb[16].mxu0 %vm749_vm2, %v1151_v45 }
 0x502   : > { %2768 = vmatprep.mubr.msk.bf16.mxu0 %vm3080_vm1, %v3079_v8  ;;  %2765 = vmatpush3.bf16.msra.mxu0 %v2943_v20 }
 0x503   : > { %2766 = vmatprep.subr.bf16.mxu0 %v3079_v8 }
 0x506   : > { %2767 = vmatpush3.bf16.msra.mxu0 %v2944_v21 }
 0x507   : > { %2784 = vmatprep.subr.bf16.mxu0 %v3079_v8 }
 0x597   : > { %v851_v46 = vpop.f32.mrb[4].mxu0 }
 0x598   : > { %857 = vst.msk [vmem:[#allocation2] sm:$0xff] %vm749_vm2, %v851_v46  ;;  %v2718_v47 = vpop.f32.mrb[5].mxu0 }
 0x599   : > { %v854_v48 = vpop.f32.mrb[6].mxu0 }
 0x59a   : > { %v2719_v49 = vpop.f32.mrb[7].mxu0 }
 0x5a8   : > { %v962_v50 = vpop.f32.mrb[8].mxu0 }
 0x5a9   : > { %969 = vrot.lane.b32.xlu0 %v962_v50, %s3723_s21  ;;  %v2730_v51 = vpop.f32.mrb[9].mxu0  ;;  %s3753_s21 = smov 48  }
 0x5aa   : > { %v965_v52 = vpop.f32.mrb[10].mxu0 }
 0x5ab   : > { %v2731_v53 = vpop.f32.mrb[11].mxu0  ;;  %v2559_v52 = vld [vmem:[%s3700_s13] ss:$0 sm:$0xff] }
 0x5cc   : > { %v1078_v56 = vpop.f32.mrb[12].mxu0 }
 0x5cd   : > { %1085 = vrot.lane.b32.xlu1 %v1078_v56, %s3722_s29  ;;  %v2742_v57 = vpop.f32.mrb[13].mxu0  ;;  %s3752_s29 = smov 56  }
 0x5ce   : > { %v1081_v58 = vpop.f32.mrb[14].mxu0 }
 0x5cf   : > { %v2743_v59 = vpop.f32.mrb[15].mxu0 }
 0x5d4   : > { %v1194_v60 = vpop.f32.mrb[16].mxu0 }
 0x5d5   : > { %1201 = vrot.lane.b32.xlu0 %v1194_v60, %s3721_s27  ;;  %v2754_v61 = vpop.f32.mrb[17].mxu0  ;;  %s3747_s27 = smov 80  }
 0x5d6   : > { %v1197_v62 = vpop.f32.mrb[18].mxu0 }
 0x5d7   : > { %v2755_v63 = vpop.f32.mrb[19].mxu0 }
 0x61b   : > { %v970_v0 = vpop.permute.xlu0 %969 }
 0x61c   : > { %973 = vst.msk [vmem:[#allocation2] sm:$0xff] %vm972_vm4, %v970_v0 }
 0x63f   : > { %v1086_v1 = vpop.permute.xlu1 %1085 }
 0x640   : > { %1089 = vst.msk [vmem:[#allocation2] sm:$0xff] %vm1088_vm5, %v1086_v1  ;;  %v2949_v1 = vld [vmem:[%s3740_s3 + $0x10] sm:$0xff]  }
 0x647   : > { %v1202_v2 = vpop.permute.xlu0 %1201 }
 0x648   : > { %1205 = vst.msk [vmem:[#allocation2] sm:$0xff] %vm1204_vm6, %v1202_v2  ;;  %v2950_v2 = vld [vmem:[%s3740_s3 + $0x18] sm:$0xff]  }
 0x64f   : > { %v1206_v3 = vld [vmem:[#allocation2] sm:$0xff] }
 0x650   : > { %v1211_v4 = vpack.c.bf16 %v1206_v3, %v1206_v3 }
 0x652   : > { %2761 = vmatmul.mubr.msk.bf16.vlgmr.msra.gmra.mrb[16].mxu1 %vm642_vm0, %v1211_v4 }
 0x653   : > { %2780 = vmatprep.mubr.msk.bf16.mxu1 %vm3080_vm1, %v3079_v8  ;;  %2773 = vmatpush3.bf16.msra.mxu1 %v2945_v31 }
 0x654   : > { %2774 = vmatprep.subr.bf16.mxu1 %v3079_v8 }
 0x657   : > { %2775 = vmatpush3.bf16.msra.mxu1 %v2946_v32 }
 0x658   : > { %2776 = vmatprep.subr.bf16.mxu1 %v3079_v8 }
 0x65b   : > { %2777 = vmatpush3.bf16.msra.mxu1 %v2947_v33 }
 0x65c   : > { %2778 = vmatprep.subr.bf16.mxu1 %v3079_v8 }
 0x65f   : > { %2779 = vmatpush3.bf16.msra.mxu1 %v2948_v34 }
 0x660   : > { %2798 = vmatprep.subr.bf16.mxu1 %v3079_v8 }
 0x725   : > { %v1268_v6 = vpop.f32.mrb[16].mxu1 }
 0x726   : > { %v1269_v7 = vadd.f32 %v2549_v5, %v1268_v6  ;;  %v2762_v9 = vpop.f32.mrb[17].mxu1 }
 0x727   : > { %v1271_v10 = vpop.f32.mrb[18].mxu1 }
 0x728   : > { %v2763_v11 = vpop.f32.mrb[19].mxu1  ;;  %v1274_v12 = vadd.f32 %v1269_v7, %v3279_v18  ;;  %v2565_v7 = vld [vmem:[%s3701_s14] ss:$0 sm:$0xff] }
 0x729   : > { %v2566_v10 = vld [vmem:[%s3702_s15] ss:$0 sm:$0xff] }
 0x72a   : > { %v1277_v13 = vsel %vm642_vm0, %v1274_v12, 0.0 }
 0x72b   : > { %1278 = vadd.xlane.f32.xlu1 %v1277_v13 }
 0x7b8   : > { %v1279_v14 = vpop.xlane.xlu1 %1278 }
 0x7b9   : > { %v1280_v15 = vmul.f32 0.03125, %v1279_v14  ;;  %v2572_v14 = vld [vmem:[%s3743_s5 + $0x1] ss:$0 sm:$0xff] }
 0x7bb   : > { %v1281_v16 = vsub.f32 %v1274_v12, %v1280_v15 }
 0x7bd   : > { %v1282_v17 = vmul.f32 %v1281_v16, %v1281_v16 }
 0x7bf   : > { %v1283_v19 = vsel %vm642_vm0, %v1282_v17, 0.0 }
 0x7c0   : > { %1284 = vadd.xlane.f32.xlu0 %v1283_v19 }
 0x84d   : > { %v1285_v18 = vpop.xlane.xlu0 %1284 }
 0x84e   : > { %v1286_v22 = vmul.f32 0.03125, %v1285_v18 }
 0x850   : > { %v1287_v23 = vadd.f32 1e-12, %v1286_v22 }
 0x852   : > { %2981 = vrsqrt.f32 %v1287_v23 }
 0x85c   : > { %v2982_v24 = vpop.eup %2981 }
 0x85d   : > { %v1289_v27 = vmul.f32 %v2982_v24, %v1281_v16 }
 0x85f   : > { %v1296_v25 = vmul.f32 %v2553_v26, %v1289_v27 }
 0x861   : > { %v1303_v29 = vadd.f32 %v2554_v28, %v1296_v25 }
 0x863   : > { %v1308_v30 = vpack.c.bf16 %v1303_v29, %v1303_v29 }
 0x865   : > { %2769 = vmatmul.mubr.msk.bf16.vlgmr.msra.gmra.mrb[20].mxu0 %vm642_vm0, %v1308_v30 }
 0x866   : > { %2788 = vmatprep.mubr.msk.bf16.mxu0 %vm3080_vm1, %v3079_v8  ;;  %2785 = vmatpush3.bf16.msra.mxu0 %v2949_v1 }
 0x867   : > { %2786 = vmatprep.subr.bf16.mxu0 %v3079_v8 }
 0x86a   : > { %2787 = vmatpush3.bf16.msra.mxu0 %v2950_v2 }
 0x86b   : > { %2792 = vmatprep.subr.bf16.mxu0 %v3079_v8 }
 0x938   : > { %v1365_v36 = vpop.f32.mrb[20].mxu0 }
 0x939   : > { %v1366_v37 = vadd.f32 %v2555_v35, %v1365_v36  ;;  %v2770_v39 = vpop.f32.mrb[21].mxu0 }
 0x93a   : > { %v1368_v40 = vpop.f32.mrb[22].mxu0 }
 0x93b   : > { %v1372_v41 = vmul.f32 0.044715, %v1366_v37  ;;  %v2771_v42 = vpop.f32.mrb[23].mxu0  ;;  %v1371_v48 = vmul.f32 0.5, %v1366_v37 }
 0x93d   : > { %v1373_v43 = vmul.f32 %v1372_v41, %v1366_v37 }
 0x93f   : > { %v1374_v44 = vmul.f32 %v1373_v43, %v1366_v37 }
 0x941   : > { %v1375_v45 = vadd.f32 %v1374_v44, %v1366_v37 }
 0x943   : > { %v1376_v46 = vmul.f32 0.7978846, %v1375_v45 }
 0x945   : > { %2983 = vtanh.f32 %v1376_v46 }
 0x94f   : > { %v2984_v47 = vpop.eup %2983 }
 0x950   : > { %v1378_v49 = vadd.f32 1.0, %v2984_v47 }
 0x952   : > { %v1379_v50 = vmul.f32 %v1378_v49, %v1371_v48 }
 0x954   : > { %v1388_v51 = vpack.c.bf16 %v1379_v50, %v1379_v50 }
 0x956   : > { %2781 = vmatmul.mubr.msk.bf16.vlgmr.msra.gmra.mrb[20].mxu1 %vm1420_vm7, %v1388_v51 }
 0x957   : > { %2800 = vmatprep.mubr.msk.bf16.mxu1 %vm3080_vm1, %v3079_v8 }
 0xa29   : > { %v1458_v53 = vpop.f32.mrb[20].mxu1 }
 0xa2a   : > { %v1459_v54 = vadd.f32 %v2559_v52, %v1458_v53  ;;  %v2782_v55 = vpop.f32.mrb[21].mxu1 }
 0xa2b   : > { %v1461_v56 = vpop.f32.mrb[22].mxu1 }
 0xa2c   : > { %v2783_v57 = vpop.f32.mrb[23].mxu1  ;;  %v1464_v58 = vadd.f32 %v1459_v54, %v1303_v29 }
 0xa2e   : > { %v1467_v59 = vsel %vm642_vm0, %v1464_v58, 0.0 }
 0xa2f   : > { %1468 = vadd.xlane.f32.xlu0 %v1467_v59 }
 0xabc   : > { %v1469_v60 = vpop.xlane.xlu0 %1468 }
 0xabd   : > { %v1470_v61 = vmul.f32 0.03125, %v1469_v60 }
 0xabf   : > { %v1471_v62 = vsub.f32 %v1464_v58, %v1470_v61 }
 0xac1   : > { %v1472_v63 = vmul.f32 %v1471_v62, %v1471_v62 }
 0xac3   : > { %v1473_v0 = vsel %vm642_vm0, %v1472_v63, 0.0 }
 0xac4   : > { %1474 = vadd.xlane.f32.xlu1 %v1473_v0 }
 0xb51   : > { %v1475_v3 = vpop.xlane.xlu1 %1474 }
 0xb52   : > { %v1476_v4 = vmul.f32 0.03125, %v1475_v3 }
 0xb54   : > { %v1477_v5 = vadd.f32 1e-12, %v1476_v4 }
 0xb56   : > { %2985 = vrsqrt.f32 %v1477_v5 }
 0xb60   : > { %v2986_v6 = vpop.eup %2985 }
 0xb61   : > { %v1479_v9 = vmul.f32 %v2986_v6, %v1471_v62 }
 0xb63   : > { %v1486_v11 = vmul.f32 %v2565_v7, %v1479_v9 }
 0xb65   : > { %v3454_v12 = vadd.f32 %v2566_v10, %v1486_v11 }
 0xb67   : > { %v1499_v13 = vpack.c.bf16 %v3454_v12, %v3454_v12 }
 0xb69   : > { %2789 = vmatmul.mubr.msk.bf16.vlgmr.msra.gmra.mrb[24].mxu0 %vm642_vm0, %v1499_v13 }
 0xb6a   : > { %2794 = vmatprep.mubr.msk.bf16.mxu0 %vm3080_vm1, %v3079_v8 }
 0xc3c   : > { %v1557_v15 = vpop.f32.mrb[24].mxu0 }
 0xc3d   : > { %v1558_v16 = vadd.f32 %v2572_v14, %v1557_v15  ;;  %v2790_v17 = vpop.f32.mrb[25].mxu0 }
 0xc3e   : > { %v1560_v19 = vpop.f32.mrb[26].mxu0 }
 0xc3f   : > { %v3464_v20 = vpack.c.bf16 %v1558_v16, %v1558_v16  ;;  %v2791_v21 = vpop.f32.mrb[27].mxu0 }
 0xc41   : > { %1676 = vrot.lane.b32.xlu1 %v3464_v20, %s3083_s25  ;;  %1565 = vrot.lane.b32.xlu0 %v3464_v20, %s3745_s0  ;;  %s3751_s25 = smov 64   ;;  %s3754_s0 = smov 40  }
 0xc45   : > { %1674 = vrot.lane.b32.xlu1 %v3464_v20, %s3746_s30  ;;  %1791 = vrot.lane.b32.xlu0 %v3464_v20, %s3747_s27  ;;  %s3755_s30 = smov 8   ;;  %s2631_s27 = sshll.u32 %s3222_s2, 4 }
 0xc46   : > { %s3095_s2 = smov [#allocation3]  }
 0xc47   : > { %s3019_s3 = sshll.u32 %s3095_s2, 4  ;;  %s3020_s3 = int_to_ptr.vmem [resolvable:$false] %s3019_s3 }
 0xc48   : > { %s3021_s5 = scalar_lea.vmem %s3020_s3, 32 }
 0xc49   : > { %1789 = vrot.lane.b32.xlu1 %v3464_v20, %s3748_s26  ;;  %1906 = vrot.lane.b32.xlu0 %v3464_v20, %s3749_s23 }
 0xc4d   : > { %1904 = vrot.lane.b32.xlu1 %v3464_v20, %s3750_s28 }
 0xcb3   : > { %v1566_v18 = vpop.permute.xlu0 %1565  ;;  %v1677_v23 = vpop.permute.xlu1 %1676 }
 0xcb4   : > { %v1571_v22 = vsel %vm749_vm2, %v1566_v18, 0  ;;  %v1682_v24 = vsel %vm749_vm2, %v1677_v23, 0 }
 0xcb5   : > { %2793 = vmatpush3.bf16.xpose.msra.mxu0 %v1571_v22 }
 0xcb6   : > { %2804 = vmatprep.subr.bf16.mxu0 %v3079_v8 }
 0xcb7   : > { %v1792_v26 = vpop.permute.xlu0 %1791  ;;  %v1675_v27 = vpop.permute.xlu1 %1674 }
 0xcb8   : > { %v1797_v28 = vsel %vm749_vm2, %v1792_v26, 0 }
 0xcbb   : > { %v1907_v25 = vpop.permute.xlu0 %1906  ;;  %v1790_v29 = vpop.permute.xlu1 %1789 }
 0xcbc   : > { %2795 = vmatmul.mubr.msk.bf16.vlgmr.msra.gmra.mrb[28].mxu0 %vm749_vm2, %v3464_v20  ;;  %v1912_v30 = vsel %vm749_vm2, %v1907_v25, 0 }
 0xcbd   : > { %2805 = vmatpush3.bf16.xpose.msra.mxu0 %v1682_v24  ;;  %2806 = vmatprep.mubr.msk.bf16.mxu0 %vm3080_vm1, %v3079_v8 }
 0xcbe   : > { %2816 = vmatprep.subr.bf16.mxu0 %v3079_v8 }
 0xcbf   : > { %v1905_v31 = vpop.permute.xlu1 %1904 }
 0xcc4   : > { %2807 = vmatmul.mubr.msk.bf16.vlgmr.msra.gmra.mrb[32].mxu0 %vm749_vm2, %v1675_v27 }
 0xcc5   : > { %2817 = vmatpush3.bf16.xpose.msra.mxu0 %v1797_v28  ;;  %2818 = vmatprep.mubr.msk.bf16.mxu0 %vm3080_vm1, %v3079_v8 }
 0xcc6   : > { %2828 = vmatprep.subr.bf16.mxu0 %v3079_v8 }
 0xccc   : > { %2819 = vmatmul.mubr.msk.bf16.vlgmr.msra.gmra.mrb[36].mxu0 %vm749_vm2, %v1790_v29 }
 0xccd   : > { %2829 = vmatpush3.bf16.xpose.msra.mxu0 %v1912_v30  ;;  %2830 = vmatprep.mubr.msk.bf16.mxu0 %vm3080_vm1, %v3079_v8 }
 0xcce   : > { %2840 = vmatprep.subr.bf16.mxu0 %v3079_v8 }
 0xcd4   : > { %2831 = vmatmul.mubr.msk.bf16.vlgmr.msra.gmra.mrb[40].mxu0 %vm749_vm2, %v1905_v31 }
 0xcd5   : > { %2844 = vmatprep.mubr.msk.bf16.mxu0 %vm3080_vm1, %v3079_v8 }
 0xd8f   : > { %v1607_v32 = vpop.f32.mrb[28].mxu0 }
 0xd90   : > { %v1608_v33 = vadd.f32 %v3330_v38, %v1607_v32  ;;  %v2796_v34 = vpop.f32.mrb[29].mxu0 }
 0xd91   : > { %v1610_v35 = vpop.f32.mrb[30].mxu0 }
 0xd92   : > { %v2797_v36 = vpop.f32.mrb[31].mxu0  ;;  %v1613_v37 = vsel %vm749_vm2, %v1608_v33, -inf }
 0xd93   : > { %1614 = vmax.xlane.f32.xlu0 %v1613_v37 }
 0xd97   : > { %v1718_v39 = vpop.f32.mrb[32].mxu0 }
 0xd98   : > { %v1719_v40 = vadd.f32 %v3330_v38, %v1718_v39  ;;  %v2808_v41 = vpop.f32.mrb[33].mxu0 }
 0xd99   : > { %v1721_v42 = vpop.f32.mrb[34].mxu0 }
 0xd9a   : > { %v2809_v43 = vpop.f32.mrb[35].mxu0  ;;  %v1724_v44 = vsel %vm749_vm2, %v1719_v40, -inf }
 0xd9b   : > { %1725 = vmax.xlane.f32.xlu1 %v1724_v44 }
 0xd9f   : > { %v1833_v45 = vpop.f32.mrb[36].mxu0 }
 0xda0   : > { %v1834_v46 = vadd.f32 %v3330_v38, %v1833_v45  ;;  %v2820_v47 = vpop.f32.mrb[37].mxu0 }
 0xda1   : > { %v1836_v48 = vpop.f32.mrb[38].mxu0  ;;  %v2951_v47 = vld [vmem:[%s3693_s6 + $0x10] sm:$0xff]  }
 0xda2   : > { %v2821_v49 = vpop.f32.mrb[39].mxu0  ;;  %v1839_v50 = vsel %vm749_vm2, %v1834_v46, -inf  ;;  %2841 = vmatpush3.bf16.msra.mxu0 %v2951_v47  ;;  %v2952_v48 = vld [vmem:[%s3693_s6 + $0x18] sm:$0xff]  }
 0xda3   : > { %1840 = vmax.xlane.f32.xlu0 %v1839_v50  ;;  %2842 = vmatprep.subr.bf16.mxu0 %v3079_v8 }
 0xda6   : > { %2843 = vmatpush3.bf16.msra.mxu0 %v2952_v48 }
 0xda7   : > { %v1948_v51 = vpop.f32.mrb[40].mxu0  ;;  %2856 = vmatprep.subr.bf16.mxu0 %v3079_v8 }
 0xda8   : > { %v1949_v52 = vadd.f32 %v3330_v38, %v1948_v51  ;;  %v2832_v53 = vpop.f32.mrb[41].mxu0 }
 0xda9   : > { %v1951_v54 = vpop.f32.mrb[42].mxu0 }
 0xdaa   : > { %v2833_v55 = vpop.f32.mrb[43].mxu0  ;;  %v1954_v56 = vsel %vm749_vm2, %v1949_v52, -inf }
 0xdab   : > { %1955 = vmax.xlane.f32.xlu0 %v1954_v56 }
 0xe20   : > { %v1615_v57 = vpop.xlane.xlu0 %1614 }
 0xe21   : > { %v1616_v58 = vsub.f32 %v1608_v33, %v1615_v57 }
 0xe23   : > { %v1617_v59 = vmul.f32 1.442695, %v1616_v58 }
 0xe25   : > { %2987 = vpow2.f32 %v1617_v59 }
 0xe28   : > { %v1726_v60 = vpop.xlane.xlu1 %1725 }
 0xe29   : > { %v1727_v61 = vsub.f32 %v1719_v40, %v1726_v60 }
 0xe2b   : > { %v1728_v62 = vmul.f32 1.442695, %v1727_v61 }
 0xe2d   : > { %2989 = vpow2.f32 %v1728_v62  ;;  %v2589_v62 = vld [vmem:[%s3694_s7 + $0x1] ss:$0 sm:$0xff] }
 0xe2f   : > { %v2988_v63 = vpop.eup %2987 }
 0xe30   : > { %v1619_v0 = vsel %vm749_vm2, %v2988_v63, 0.0  ;;  %v1841_v1 = vpop.xlane.xlu0 %1840 }
 0xe31   : > { %1620 = vadd.xlane.f32.xlu1 %v1619_v0  ;;  %v1842_v9 = vsub.f32 %v1834_v46, %v1841_v1 }
 0xe33   : > { %v1843_v10 = vmul.f32 1.442695, %v1842_v9 }
 0xe37   : > { %v2990_v38 = vpop.eup %2989 }
 0xe38   : > { %v1956_v2 = vpop.xlane.xlu0 %1955  ;;  %v1730_v3 = vsel %vm749_vm2, %v2990_v38, 0.0 }
 0xe39   : > { %v1957_v4 = vsub.f32 %v1949_v52, %v1956_v2  ;;  %1731 = vadd.xlane.f32.xlu0 %v1730_v3 }
 0xe3b   : > { %v1958_v5 = vmul.f32 1.442695, %v1957_v4 }
 0xe3d   : > { %2991 = vpow2.f32 %v1958_v5 }
 0xe3e   : > { %2993 = vpow2.f32 %v1843_v10 }
 0xe42   : > { %1625 = vrot.lane.b32.xlu1 %v3464_v20, %s3751_s25  ;;  %s3756_s25 = smov 16  }
 0xe47   : > { %v2992_v6 = vpop.eup %2991 }
 0xe48   : > { %v1960_v7 = vsel %vm749_vm2, %v2992_v6, 0.0  ;;  %v2994_v11 = vpop.eup %2993 }
 0xe49   : > { %1961 = vadd.xlane.f32.xlu0 %v1960_v7  ;;  %v1845_v13 = vsel %vm749_vm2, %v2994_v11, 0.0 }
 0xe5f   : > { %1736 = vrot.lane.b32.xlu0 %v3464_v20, %s3752_s29  ;;  %s3757_s29 = smov 24  }
 0xe66   : > { %1846 = vadd.xlane.f32.xlu1 %v1845_v13  ;;  %v2954_v13 = vld [vmem:[%s3697_s10 + $0x18] sm:$0xff]  }
 0xe77   : > { %1851 = vrot.lane.b32.xlu1 %v3464_v20, %s3753_s21 }
 0xe7b   : > { %1966 = vrot.lane.b32.xlu1 %v3464_v20, %s3754_s0 }
 0xebe   : > { %v1621_v14 = vpop.xlane.xlu1 %1620 }
 0xebf   : > { %2995 = vrcp.f32 %v1621_v14 }
 0xec2   : > { %v1626_v15 = vpop.permute.xlu1 %1625 }
 0xec3   : > { %v1631_v16 = vsel %vm813_vm3, %v1626_v15, 0 }
 0xec4   : > { %2799 = vmatpush3.bf16.msra.mxu1 %v1631_v16 }
 0xec5   : > { %2810 = vmatprep.subr.bf16.mxu1 %v3079_v8 }
 0xec6   : > { %v1732_v19 = vpop.xlane.xlu0 %1731 }
 0xec7   : > { %2997 = vrcp.f32 %v1732_v19 }
 0xec9   : > { %v2996_v17 = vpop.eup %2995 }
 0xeca   : > { %v1623_v21 = vmul.f32 %v2996_v17, %v2988_v63  ;;  %v2595_v17 = vld [vmem:[%s3695_s8 + $0x1] ss:$0 sm:$0xff] }
 0xecc   : > { %v1624_v18 = vpack.c.bf16 %v1623_v21, %v1623_v21  ;;  %v2596_v21 = vld [vmem:[%s3696_s9 + $0x1] ss:$0 sm:$0xff] }
 0xece   : > { %2801 = vmatmul.mubr.msk.bf16.vlgmr.msra.gmra.mrb[24].mxu1 %vm749_vm2, %v1624_v18 }
 0xecf   : > { %2812 = vmatprep.mubr.msk.bf16.mxu1 %vm3080_vm1, %v3079_v8 }
 0xed1   : > { %v2998_v22 = vpop.eup %2997 }
 0xed2   : > { %v1734_v23 = vmul.f32 %v2998_v22, %v2990_v38 }
 0xed4   : > { %v1735_v27 = vpack.c.bf16 %v1734_v23, %v1734_v23  ;;  %v2955_v23 = vld [vmem:[%s3699_s12 + $0x20] sm:$0xff]  }
 0xed6   : > { %v1962_v20 = vpop.xlane.xlu0 %1961 }
 0xeda   : > { %v1737_v24 = vpop.permute.xlu0 %1736 }
 0xedb   : > { %v1742_v26 = vsel %vm813_vm3, %v1737_v24, 0  ;;  %v2956_v24 = vld [vmem:[%s3699_s12 + $0x28] sm:$0xff]  }
 0xedc   : > { %2811 = vmatpush3.bf16.msra.mxu1 %v1742_v26  ;;  %v2957_v26 = vld [vmem:[%s3699_s12 + $0x30] sm:$0xff]  }
 0xedd   : > { %2822 = vmatprep.subr.bf16.mxu1 %v3079_v8 }
 0xedf   : > { %2813 = vmatmul.mubr.msk.bf16.vlgmr.msra.gmra.mrb[28].mxu1 %vm749_vm2, %v1735_v27  ;;  %v2958_v27 = vld [vmem:[%s3699_s12 + $0x38] sm:$0xff]  }
 0xee0   : > { %2824 = vmatprep.mubr.msk.bf16.mxu1 %vm3080_vm1, %v3079_v8 }
 0xef3   : > { %v1847_v28 = vpop.xlane.xlu1 %1846 }
 0xef4   : > { %2999 = vrcp.f32 %v1847_v28  ;;  %v2602_v28 = vld [vmem:[%s3698_s11 + $0x1] ss:$0 sm:$0xff] }
 0xef5   : > { %3001 = vrcp.f32 %v1962_v20 }
 0xef7   : > { %v1852_v25 = vpop.permute.xlu1 %1851 }
 0xef8   : > { %v1857_v29 = vsel %vm813_vm3, %v1852_v25, 0 }
 0xef9   : > { %2823 = vmatpush3.bf16.msra.mxu1 %v1857_v29 }
 0xefa   : > { %2834 = vmatprep.subr.bf16.mxu1 %v3079_v8 }
 0xefb   : > { %v1967_v32 = vpop.permute.xlu1 %1966 }
 0xefc   : > { %v1972_v35 = vsel %vm813_vm3, %v1967_v32, 0 }
 0xefe   : > { %v3000_v30 = vpop.eup %2999 }
 0xeff   : > { %v1849_v31 = vmul.f32 %v3000_v30, %v2994_v11  ;;  %v3002_v34 = vpop.eup %3001  ;;  %v2953_v11 = vld [vmem:[%s3697_s10 + $0x10] sm:$0xff]  }
 0xf00   : > { %v1964_v36 = vmul.f32 %v3002_v34, %v2992_v6 }
 0xf01   : > { %v1850_v33 = vpack.c.bf16 %v1849_v31, %v1849_v31 }
 0xf02   : > { %v1965_v37 = vpack.c.bf16 %v1964_v36, %v1964_v36 }
 0xf03   : > { %2825 = vmatmul.mubr.msk.bf16.vlgmr.msra.gmra.mrb[32].mxu1 %vm749_vm2, %v1850_v33 }
 0xf04   : > { %2835 = vmatpush3.bf16.msra.mxu1 %v1972_v35  ;;  %2836 = vmatprep.mubr.msk.bf16.mxu1 %vm3080_vm1, %v3079_v8 }
 0xf05   : > { %2848 = vmatprep.subr.bf16.mxu1 %v3079_v8 }
 0xf0b   : > { %2837 = vmatmul.mubr.msk.bf16.vlgmr.msra.gmra.mrb[36].mxu1 %vm749_vm2, %v1965_v37 }
 0xf0c   : > { %2852 = vmatprep.mubr.msk.bf16.mxu1 %vm3080_vm1, %v3079_v8  ;;  %2849 = vmatpush3.bf16.msra.mxu1 %v2953_v11 }
 0xf0d   : > { %2850 = vmatprep.subr.bf16.mxu1 %v3079_v8 }
 0xf10   : > { %2851 = vmatpush3.bf16.msra.mxu1 %v2954_v13 }
 0xf11   : > { %2868 = vmatprep.subr.bf16.mxu1 %v3079_v8 }
 0xfa1   : > { %v1667_v39 = vpop.f32.mrb[24].mxu1 }
 0xfa2   : > { %1673 = vst.msk [vmem:[#allocation2] sm:$0xff] %vm749_vm2, %v1667_v39  ;;  %v2802_v40 = vpop.f32.mrb[25].mxu1 }
 0xfa3   : > { %v1670_v41 = vpop.f32.mrb[26].mxu1 }
 0xfa4   : > { %v2803_v42 = vpop.f32.mrb[27].mxu1 }
 0xfb2   : > { %v1778_v43 = vpop.f32.mrb[28].mxu1 }
 0xfb3   : > { %1785 = vrot.lane.b32.xlu0 %v1778_v43, %s3755_s30  ;;  %v2814_v44 = vpop.f32.mrb[29].mxu1  ;;  %s629_s30 = sand.u32 1, %s3069_s22  }
 0xfb4   : > { %v1781_v45 = vpop.f32.mrb[30].mxu1  ;;  %v2615_v44 = vld [vmem:[%s3700_s13 + $0x1] ss:$0 sm:$0xff]  ;;  %s630_s26 = scalar_lea.vmem [#allocation3], %s629_s30  ;;  %s2453_s21 = scalar_lea.sflag [#allocation4], %s629_s30 }
 0xfb5   : > { %v2815_v46 = vpop.f32.mrb[31].mxu1  ;;  %s2465_s23 = sshll.u32 %s630_s26, 4  ;;  %s3646_s23 = int_to_ptr.vmem [resolvable:$true] %s2465_s23 }
 0xfb6   : > { %s3015_s0 = scalar_lea.vmem %s3646_s23, 16  ;;  %p3022_p0 = scmp.lt.s32.totalorder %s3646_s23, %s3020_s3 }
 0xfb7   : > { %p3016_p11 = scmp.ne.s32.totalorder %s3646_s23, %s3015_s0  ;;  %p3023_p1 = scmp.lt.s32.totalorder %s3021_s5, %s3015_s0 }
 0xfb9   : > { %p3017_p12 = pnand %p3016_p11, %p3239_p5  ;;  %p3024_p2 = por %p3023_p1, %p3022_p0 }
 0xfbb   : > { %p3018_p13 = pneg %p3017_p12 }
 0xfbd   : > { %p3025_p3 = pnand %p3024_p2, %p3018_p13 }
 0xfd6   : > { %v1893_v49 = vpop.f32.mrb[32].mxu1 }
 0xfd7   : > { %1900 = vrot.lane.b32.xlu1 %v1893_v49, %s3756_s25  ;;  %v2826_v50 = vpop.f32.mrb[33].mxu1 }
 0xfd8   : > { %v1896_v51 = vpop.f32.mrb[34].mxu1 }
 0xfd9   : > { %v2827_v52 = vpop.f32.mrb[35].mxu1 }
 0xfde   : > { %v2008_v53 = vpop.f32.mrb[36].mxu1 }
 0xfdf   : > { %2015 = vrot.lane.b32.xlu0 %v2008_v53, %s3757_s29  ;;  %v2838_v54 = vpop.f32.mrb[37].mxu1  ;;  %s3644_s29 = scalar_lea.hbm %s3707_s20, %s2631_s27 }
 0xfe0   : > { %v2011_v55 = vpop.f32.mrb[38].mxu1 }
 0xfe1   : > { %v2839_v56 = vpop.f32.mrb[39].mxu1 }
0x1025   : > { %v1786_v57 = vpop.permute.xlu0 %1785 }
0x1026   : > { %1788 = vst.msk [vmem:[#allocation2] sm:$0xff] %vm972_vm4, %v1786_v57  ;;  %v2959_v57 = vld [vmem:[%s3703_s16] sm:$0xff]  }
0x1049   : > { %v1901_v58 = vpop.permute.xlu1 %1900 }
0x104a   : > { %1903 = vst.msk [vmem:[#allocation2] sm:$0xff] %vm1088_vm5, %v1901_v58  ;;  %v2960_v58 = vld [vmem:[%s3703_s16 + $0x8] sm:$0xff]  }
0x1051   : > { %v2016_v59 = vpop.permute.xlu0 %2015 }
0x1052   : > { %2018 = vst.msk [vmem:[#allocation2] sm:$0xff] %vm1204_vm6, %v2016_v59 }
0x1059   : > { %v2019_v60 = vld [vmem:[#allocation2] sm:$0xff] }
0x105a   : > { %v2025_v61 = vpack.c.bf16 %v2019_v60, %v2019_v60 }
0x105c   : > { %2845 = vmatmul.mubr.msk.bf16.vlgmr.msra.gmra.mrb[44].mxu0 %vm642_vm0, %v2025_v61 }
0x105d   : > { %2864 = vmatprep.mubr.msk.bf16.mxu0 %vm3080_vm1, %v3079_v8  ;;  %2857 = vmatpush3.bf16.msra.mxu0 %v2955_v23 }
0x105e   : > { %2858 = vmatprep.subr.bf16.mxu0 %v3079_v8 }
0x1061   : > { %2859 = vmatpush3.bf16.msra.mxu0 %v2956_v24 }
0x1062   : > { %2860 = vmatprep.subr.bf16.mxu0 %v3079_v8 }
0x1065   : > { %2861 = vmatpush3.bf16.msra.mxu0 %v2957_v26 }
0x1066   : > { %2862 = vmatprep.subr.bf16.mxu0 %v3079_v8 }
0x1069   : > { %2863 = vmatpush3.bf16.msra.mxu0 %v2958_v27 }
0x112f   : > { %v2083_v63 = vpop.f32.mrb[44].mxu0 }
0x1130   : > { %v2084_v0 = vadd.f32 %v2589_v62, %v2083_v63  ;;  %v2846_v1 = vpop.f32.mrb[45].mxu0  ;;  %v2623_v63 = vld [vmem:[%s3701_s14 + $0x1] ss:$0 sm:$0xff] }
0x1131   : > { %v2086_v38 = vpop.f32.mrb[46].mxu0  ;;  %v2624_v1 = vld [vmem:[%s3702_s15 + $0x1] ss:$0 sm:$0xff] }
0x1132   : > { %v2847_v2 = vpop.f32.mrb[47].mxu0  ;;  %v2089_v3 = vadd.f32 %v2084_v0, %v3454_v12 }
0x1134   : > { %v2094_v4 = vsel %vm642_vm0, %v2089_v3, 0.0 }
0x1135   : > { %2095 = vadd.xlane.f32.xlu1 %v2094_v4  ;;  %v2961_v4 = vld [vmem:[%s3705_s18] sm:$0xff]  }
0x11c2   : > { %v2096_v5 = vpop.xlane.xlu1 %2095 }
0x11c3   : > { %v2097_v6 = vmul.f32 0.03125, %v2096_v5  ;;  %v2962_v5 = vld [vmem:[%s3705_s18 + $0x8] sm:$0xff]  }
0x11c5   : > { %v2098_v7 = vsub.f32 %v2089_v3, %v2097_v6  ;;  %v2321_v6 = vld [vmem:[%s3704_s17] sm:$0x1] }
0x11c7   : > { %v2099_v9 = vmul.f32 %v2098_v7, %v2098_v7 }
0x11c9   : > { %v2100_v10 = vsel %vm642_vm0, %v2099_v9, 0.0 }
0x11ca   : > { %2101 = vadd.xlane.f32.xlu0 %v2100_v10 }
0x1257   : > { %v2102_v12 = vpop.xlane.xlu0 %2101 }
0x1258   : > { %v2103_v14 = vmul.f32 0.03125, %v2102_v12 }
0x125a   : > { %v2104_v15 = vadd.f32 1e-12, %v2103_v14 }
0x125c   : > { %3003 = vrsqrt.f32 %v2104_v15 }
0x1266   : > { %v3004_v16 = vpop.eup %3003 }
0x1267   : > { %v2106_v19 = vmul.f32 %v3004_v16, %v2098_v7 }
0x1269   : > { %v2113_v18 = vmul.f32 %v2595_v17, %v2106_v19 }
0x126b   : > { %v2120_v22 = vadd.f32 %v2596_v21, %v2113_v18 }
0x126d   : > { %v2126_v20 = vpack.c.bf16 %v2120_v22, %v2120_v22 }
0x126f   : > { %2853 = vmatmul.mubr.msk.bf16.vlgmr.msra.gmra.mrb[40].mxu1 %vm642_vm0, %v2126_v20 }
0x1270   : > { %2872 = vmatprep.mubr.msk.bf16.mxu1 %vm3080_vm1, %v3079_v8  ;;  %2869 = vmatpush3.bf16.msra.mxu1 %v2959_v57 }
0x1271   : > { %2870 = vmatprep.subr.bf16.mxu1 %v3079_v8 }
0x1274   : > { %2871 = vmatpush3.bf16.msra.mxu1 %v2960_v58 }
0x1275   : > { %2876 = vmatprep.subr.bf16.mxu1 %v3079_v8 }
0x1342   : > { %v2184_v25 = vpop.f32.mrb[40].mxu1 }
0x1343   : > { %v2185_v29 = vadd.f32 %v2602_v28, %v2184_v25  ;;  %v2854_v30 = vpop.f32.mrb[41].mxu1 }
0x1344   : > { %v2187_v31 = vpop.f32.mrb[42].mxu1 }
0x1345   : > { %v2191_v32 = vmul.f32 0.044715, %v2185_v29  ;;  %v2855_v33 = vpop.f32.mrb[43].mxu1  ;;  %v2190_v40 = vmul.f32 0.5, %v2185_v29 }
0x1347   : > { %v2192_v34 = vmul.f32 %v2191_v32, %v2185_v29 }
0x1349   : > { %v2193_v35 = vmul.f32 %v2192_v34, %v2185_v29 }
0x134b   : > { %v2194_v36 = vadd.f32 %v2193_v35, %v2185_v29 }
0x134d   : > { %v2195_v37 = vmul.f32 0.7978846, %v2194_v36 }
0x134f   : > { %3005 = vtanh.f32 %v2195_v37 }
0x1359   : > { %v3006_v39 = vpop.eup %3005 }
0x135a   : > { %v2197_v41 = vadd.f32 1.0, %v3006_v39 }
0x135c   : > { %v2198_v42 = vmul.f32 %v2197_v41, %v2190_v40 }
0x135e   : > { %v2208_v43 = vpack.c.bf16 %v2198_v42, %v2198_v42 }
0x1360   : > { %2865 = vmatmul.mubr.msk.bf16.vlgmr.msra.gmra.mrb[48].mxu0 %vm1420_vm7, %v2208_v43 }
0x1433   : > { %v2278_v45 = vpop.f32.mrb[48].mxu0 }
0x1434   : > { %v2279_v46 = vadd.f32 %v2615_v44, %v2278_v45  ;;  %v2866_v47 = vpop.f32.mrb[49].mxu0 }
0x1435   : > { %v2281_v48 = vpop.f32.mrb[50].mxu0 }
0x1436   : > { %v2867_v49 = vpop.f32.mrb[51].mxu0  ;;  %v2284_v50 = vadd.f32 %v2279_v46, %v2120_v22 }
0x1438   : > { %v2289_v51 = vsel %vm642_vm0, %v2284_v50, 0.0 }
0x1439   : > { %2290 = vadd.xlane.f32.xlu0 %v2289_v51 }
0x14c6   : > { %v2291_v52 = vpop.xlane.xlu0 %2290 }
0x14c7   : > { %v2292_v53 = vmul.f32 0.03125, %v2291_v52 }
0x14c9   : > { %v2293_v54 = vsub.f32 %v2284_v50, %v2292_v53 }
0x14cb   : > { %v2294_v55 = vmul.f32 %v2293_v54, %v2293_v54 }
0x14cd   : > { %v2295_v56 = vsel %vm642_vm0, %v2294_v55, 0.0 }
0x14ce   : > { %2296 = vadd.xlane.f32.xlu1 %v2295_v56 }
0x155b   : > { %v2297_v59 = vpop.xlane.xlu1 %2296 }
0x155c   : > { %v2298_v60 = vmul.f32 0.03125, %v2297_v59 }
0x155e   : > { %v2299_v61 = vadd.f32 1e-12, %v2298_v60 }
0x1560   : > { %3007 = vrsqrt.f32 %v2299_v61 }
0x156a   : > { %v3008_v62 = vpop.eup %3007 }
0x156b   : > { %v2301_v0 = vmul.f32 %v3008_v62, %v2293_v54 }
0x156d   : > { %v2308_v38 = vmul.f32 %v2623_v63, %v2301_v0 }
0x156f   : > { %v2315_v2 = vadd.f32 %v2624_v1, %v2308_v38 }
0x1571   : > { %v2320_v3 = vpack.c.bf16 %v2315_v2, %v2315_v2 }
0x1573   : > { %2873 = vmatmul.mubr.msk.bf16.vlgmr.msra.gmra.mrb[44].mxu1 %vm642_vm0, %v2320_v3 }
0x1574   : > { %2880 = vmatprep.mubr.msk.bf16.mxu1 %vm3080_vm1, %v3079_v8  ;;  %2877 = vmatpush3.bf16.msra.mxu1 %v2961_v4 }
0x1575   : > { %2878 = vmatprep.subr.bf16.mxu1 %v3079_v8  ;;  %v2383_v8 = vld [vmem:[%s3706_s19] sm:$0x1] }
0x1578   : > { %2879 = vmatpush3.bf16.msra.mxu1 %v2962_v5 }
0x1646   : > { %v2371_v7 = vpop.f32.mrb[44].mxu1 }
0x1647   : > { %v2372_v9 = vadd.f32 %v2371_v7, %v2321_v6  ;;  %v2874_v10 = vpop.f32.mrb[45].mxu1 }
0x1648   : > { %v2374_v11 = vpop.f32.mrb[46].mxu1 }
0x1649   : > { %3009 = vtanh.f32 %v2372_v9  ;;  %v2875_v13 = vpop.f32.mrb[47].mxu1 }
0x1653   : > { %v3010_v12 = vpop.eup %3009 }
0x1654   : > { %v2382_v14 = vpack.c.bf16 %v3010_v12, %v3010_v12 }
0x1656   : > { %2881 = vmatmul.mubr.msk.bf16.vlgmr.msra.gmra.mrb[48].mxu1 %vm642_vm0, %v2382_v14 }
0x1729   : > { %v2433_v15 = vpop.f32.mrb[48].mxu1 }
0x172a   : > { %v2434_v16 = vadd.f32 %v2433_v15, %v2383_v8  ;;  %v2882_v17 = vpop.f32.mrb[49].mxu1 }
0x172b   : > { %v2436_v19 = vpop.f32.mrb[50].mxu1 }
0x172c   : > { %v2883_v21 = vpop.f32.mrb[51].mxu1  ;;  %v2440_v18 = vsel %vm2439_vm8, %v2434_v16, -inf }
0x172d   : > { %2441 = vmax.xlane.f32.xlu0 %v2440_v18 }
0x17ba   : > { %v2442_v22 = vpop.xlane.xlu0 %2441 }
0x17bb   : > { %v2443_v20 = vsub.f32 %v2434_v16, %v2442_v22 }
0x17bd   : > { %v2444_v23 = vmul.f32 1.442695, %v2443_v20 }
0x17bf   : > { %3011 = vpow2.f32 %v2444_v23 }
0x17c9   : > { %v3012_v24 = vpop.eup %3011 }
0x17ca   : > { %v2446_v26 = vsel %vm2439_vm8, %v3012_v24, 0.0 }
0x17cb   : > { %2447 = vadd.xlane.f32.xlu1 %v2446_v26 }
0x1858   : > { %v2448_v27 = vpop.xlane.xlu1 %2447 }
0x1859   : > { %3013 = vrcp.f32 %v2448_v27 }
0x1863   : > { %v3014_v28 = vpop.eup %3013 }
0x1864   : > { %v2450_v25 = vmul.f32 %v3014_v28, %v3012_v24 }
0x1866   : > { %2451 = vst.msk [vmem:[%s630_s26] sm:$0x1] %vm2439_vm8, %v2450_v25 }
0x1867   : > { %3028 = shalt.err (!%p3025_p3)
}
0x1868   : > { %s3029_s30 = scalar_lea.hbm %s3644_s29, 16  ;;  %s3033_s28 = scalar_lea.hbm %s3707_s20, 32 }
0x1869   : > { %p3030_p4 = scmp.ne.s32.totalorder %s3644_s29, %s3029_s30  ;;  %p3034_p9 = scmp.lt.u32.totalorder %s3644_s29, %s3707_s20 }
0x186a   : > { %p3035_p10 = scmp.lt.u32.totalorder %s3033_s28, %s3029_s30  ;;  %p3037_p12 = scmp.lt.u32.totalorder %s3029_s30, %s3644_s29 }
0x186b   : > { %p3031_p7 = pnand %p3030_p4, %p3239_p5 }
0x186c   : > { %p3036_p11 = por %p3035_p10, %p3034_p9 }
0x186d   : > { %p3032_p8 = pneg %p3031_p7 }
0x186e   : > { %p3038_p13 = por %p3037_p12, %p3036_p11 }
0x1870   : > { %p3039_p0 = pnand %p3038_p13, %p3032_p8 }
0x1872   : > { %3042 = shalt.err (!%p3039_p0)
}
0x1873   : > { %2884 = dma.vmem_to_hbm [thread:$0]  (%p3239_p5), %s3646_s23, 16, %s3644_s29, %s2453_s21  }
0x1874 PF: > { %p2890_p1 = scmp.ge.s32.totalorder %s3077_s24, 2  ;;  %s2477_s0 = sand.u32 1, %s3065_s1  }
0x1875   : > { %s2478_s2 = scalar_lea.sflag [#allocation4], %s2477_s0 }
0x1876   : > { %p2887_p2 = pnand %p2890_p1, %p3243_p6 }
0x1878   : > { %3060 = dma.done.wait (!%p2887_p2), %s2478_s2, 16  }
0x1879   : > { %3062 = vsyncadd (!%p2887_p2), %s2478_s2, 4294967280  ;;  %s3759_s24 = sld [smem:[#allocation7_spill]]  ;;  %s3760_s30 = sld [smem:[#allocation6_spill]] }
0x187a   : > { %s3761_s23 = sld [smem:[#allocation8_spill]]  ;;  %s3762_s1 = smov %s3069_s22 }
0x187f   : > { %p30_p3 = scmp.ge.s32.totalorder %s3759_s24, 4   ;;  %s3763_s22 = smov %s3760_s30 }
0x1881   :  { %32 = sbr.rel (!%p30_p3) target bundleno = 10 (0xa), region = 150 }
0x1888   :  { %2482 = vsyncpa [#allocation4], 1 }
0x1889   :  { %2484 = vsyncpa [#allocation4 + $0x1], 1 }

</bundles_post_ra>
